<compile_context>
chip_gen: v7x
topology: tpu7x:2x2x1
jax: 0.10.0
libtpu: 0.0.40
codegen_flags: <defaults>
</compile_context>

<pallas_src>
import math

import jax
import jax.numpy as jnp
from jax.experimental import pallas as pl
from jax.experimental.pallas import tpu as pltpu

# ----------------------------- config -----------------------------------
LAYER_SIZES = [16, 32, 8]
BASIS_FUNCTIONS = ["fourier", "gaussian", "taylor"]

FREQ_COUNT = 3              # Fourier: frequency_count
G_GRID_RANGE = (-1.0, 1.0)  # Gaussian: g_grid_range
G_GRID_COUNT = 6            # Gaussian: g_grid_count
T_ORDER = 5                 # Taylor: t_order (powers 0..T_ORDER)

BATCH = 8

# Flip to cast MXU operands to bf16 (keeps f32 accumulation).  Worth it on
# v6e/v7x at large batch; loosen the allclose tolerance if enabled.
USE_BF16_MXU = False

_NUM_BASIS = {
    "fourier": 2 * FREQ_COUNT,
    "gaussian": G_GRID_COUNT,
    "taylor": T_ORDER + 1,
}


# ---------------------- in-kernel basis expansions ------------------------
# Each returns a list of K arrays, each shaped like x ((B, Din)).  Feature
# ordering matches concat([block_0, block_1, ...], axis=-1), i.e. row index
# of the packed weight matrix is  k * Din + input_index.

def _fourier_feats(x):
    # cos(kx), sin(kx) for k=1..FREQ_COUNT via angle-addition (2 EUP ops total).
    c1 = jnp.cos(x)
    s1 = jnp.sin(x)
    feats = [c1, s1]
    ck, sk = c1, s1
    for _ in range(2, FREQ_COUNT + 1):
        ck, sk = ck * c1 - sk * s1, sk * c1 + ck * s1
        feats.append(ck)
        feats.append(sk)
    return feats


def _gaussian_feats(x):
    # exp(-((x - c_j)/h)^2) for equally spaced centers c_j = lo + j*h.
    # With z = (x - lo)/h:  g_j = g_{j-1} * exp(2z) * exp(-(2j-1))
    # -> only 2 EUP exps, rest is VPU multiplies by compile-time constants.
    lo, hi = G_GRID_RANGE
    h = (hi - lo) / (G_GRID_COUNT - 1)
    z = (x - lo) * (1.0 / h)
    g = jnp.exp(-(z * z))
    r = jnp.exp(2.0 * z)
    feats = [g]
    for j in range(1, G_GRID_COUNT):
        g = g * (r * math.exp(-(2 * j - 1)))
        feats.append(g)
    return feats


def _taylor_feats(x):
    # [1, x, x^2, ..., x^T_ORDER]  — pure VPU multiplies.
    feats = [jnp.ones_like(x)]
    p = x
    for _ in range(1, T_ORDER + 1):
        feats.append(p)
        p = p * x
    return feats


_FEAT_FNS = {
    "fourier": _fourier_feats,
    "gaussian": _gaussian_feats,
    "taylor": _taylor_feats,
}


# ------------------------------ fused kernel ------------------------------
def _kan_layer(x, w_ref, basis):
    # x: (Bt, Din) f32; w_ref: (K, Din, Dout) VMEM ref.
    # y = sum_k basis_k(x) @ W[k]   (no lane-wise concatenation).
    feats = _FEAT_FNS[basis](x)
    acc = None
    for k, fk in enumerate(feats):
        wk = w_ref[k]                      # static index -> (Din, Dout) slice
        if USE_BF16_MXU:
            fk = fk.astype(jnp.bfloat16)
            wk = wk.astype(jnp.bfloat16)
        t = jnp.dot(fk, wk, preferred_element_type=jnp.float32)
        acc = t if acc is None else acc + t
    return acc


def _fused_hybrid_kernel(c_ref, x_ref, *refs):
    # c_ref: (N,) SMEM contributions; x_ref: (Bt, Din0) VMEM;
    # refs = (W[net0,l0], W[net0,l1], W[net1,l0], ..., o_ref)
    n_layers = len(LAYER_SIZES) - 1
    w_refs = refs[:-1]
    o_ref = refs[-1]

    x = x_ref[...].astype(jnp.float32)
    out = None
    for i, basis in enumerate(BASIS_FUNCTIONS):
        h = x
        for l in range(n_layers):
            h = _kan_layer(h, w_refs[i * n_layers + l], basis)
        term = c_ref[i] * h                # SMEM scalar * vreg tile (VPU FMA)
        out = term if out is None else out + term
    # NOTE: Dout=8 (<128 lanes) -> masked stores; only worth padding to 128
    # once the batch is large enough for output stores to show in a profile.
    o_ref[...] = out


def hybrid_kan_forward(params, x, *, tile_b=None):
    b, din0 = x.shape
    assert din0 == LAYER_SIZES[0]
    dout = LAYER_SIZES[-1]

    weights = []
    for basis in BASIS_FUNCTIONS:
        weights.extend(params[basis])      # each (K, Din, Dout), ~56 KB total

    if tile_b is None:
        # Full batch in one block for small B; 1024-row tiles (multiple of 8,
        # ~1 MB of activations) otherwise — comfortably inside v7x's 32 MiB
        # scoped VMEM as well as v5e/v6e.
        tile_b = b if b <= 1024 else 1024
    grid = (pl.cdiv(b, tile_b),)

    c_spec = pl.BlockSpec(memory_space=pltpu.MemorySpace.SMEM)
    x_spec = pl.BlockSpec((tile_b, din0), lambda bi: (bi, 0))
    w_specs = [pl.BlockSpec(w.shape, lambda bi: (0, 0, 0)) for w in weights]
    out_spec = pl.BlockSpec((tile_b, dout), lambda bi: (bi, 0))

    return pl.pallas_call(
        _fused_hybrid_kernel,
        out_shape=jax.ShapeDtypeStruct((b, dout), jnp.float32),
        grid_spec=pltpu.PrefetchScalarGridSpec(
            num_scalar_prefetch=0,
            grid=grid,
            in_specs=[c_spec, x_spec] + w_specs,
            out_specs=out_spec,
        ),
        compiler_params=pltpu.CompilerParams(
            dimension_semantics=("parallel",),
        ),
    )(params["contributions"], x, *weights)


# ------------------------ parameter construction --------------------------
def init_params(key):
    params = {}
    for basis in BASIS_FUNCTIONS:
        k_basis = _NUM_BASIS[basis]
        weights = []
        for din, dout in zip(LAYER_SIZES[:-1], LAYER_SIZES[1:]):
            key, sub = jax.random.split(key)
            w = jax.random.normal(sub, (k_basis, din, dout), dtype=jnp.float32)
            w = w * (1.0 / jnp.sqrt(float(din * k_basis)))
            weights.append(w)
        params[basis] = weights
    # contributions = full((bf_num,), 1/bf_num), as in the PyTorch __init__
    params["contributions"] = jnp.full(
        (len(BASIS_FUNCTIONS),), 1.0 / len(BASIS_FUNCTIONS), dtype=jnp.float32)
    return params


# --------------------------- pure-JAX reference ---------------------------
# Independent math: direct cos(kx)/sin(kx), direct per-center exp, x**p, and a
# single packed (Din*K, Dout) matmul per layer (feature index = k*Din + d).
def _fourier_direct(x):
    feats = []
    for k in range(1, FREQ_COUNT + 1):
        feats.append(jnp.cos(float(k) * x))
        feats.append(jnp.sin(float(k) * x))
    return feats


def _gaussian_direct(x):
    lo, hi = G_GRID_RANGE
    h = (hi - lo) / (G_GRID_COUNT - 1)
    return [jnp.exp(-(((x - (lo + j * h)) / h) ** 2)) for j in range(G_GRID_COUNT)]


def _taylor_direct(x):
    return [x ** p for p in range(T_ORDER + 1)]


_DIRECT_FNS = {
    "fourier": _fourier_direct,
    "gaussian": _gaussian_direct,
    "taylor": _taylor_direct,
}


def hybrid_kan_reference(params, x):
    total = None
    for i, basis in enumerate(BASIS_FUNCTIONS):
        h = x.astype(jnp.float32)
        for w in params[basis]:
            kb, din, dout = w.shape
            feats = jnp.concatenate(_DIRECT_FNS[basis](h), axis=-1)   # (B, K*Din)
            h = jnp.dot(feats, w.reshape(kb * din, dout),
                        precision=jax.lax.Precision.HIGHEST)
        term = params["contributions"][i] * h
        total = term if total is None else total + term
    return total


# --------------------------------- main -----------------------------------
if __name__ == "__main__":
    key = jax.random.PRNGKey(0)
    key, pkey, xkey = jax.random.split(key, 3)
    params = init_params(pkey)
    x = jax.random.normal(xkey, (BATCH, LAYER_SIZES[0]), dtype=jnp.float32)

    out = hybrid_kan_forward(params, x)
    out = jax.block_until_ready(out)

    ref = hybrid_kan_reference(params, x)
    assert out.shape == (BATCH, LAYER_SIZES[-1])
    assert jnp.allclose(out, ref, rtol=1e-3, atol=1e-3), "mismatch vs reference"

    print("KERNEL_OK")
</pallas_src>

<mosaic_0001>
module attributes {stable_mosaic.version = 11 : i64} {
  func.func @_fused_hybrid_kernel(%arg0: i32, %arg1: memref<3xf32, #tpu.memory_space<smem>>, %arg2: memref<8x16xf32, #tpu.memory_space<vmem>>, %arg3: memref<6x16x32xf32, #tpu.memory_space<vmem>>, %arg4: memref<6x32x8xf32, #tpu.memory_space<vmem>>, %arg5: memref<6x16x32xf32, #tpu.memory_space<vmem>>, %arg6: memref<6x32x8xf32, #tpu.memory_space<vmem>>, %arg7: memref<6x16x32xf32, #tpu.memory_space<vmem>>, %arg8: memref<6x32x8xf32, #tpu.memory_space<vmem>>, %arg9: memref<8x8xf32, #tpu.memory_space<vmem>>) attributes {dimension_semantics = [#tpu.dimension_semantics<parallel>], iteration_bounds = array<i64: 1>, scalar_prefetch = 0 : i64, scratch_operands = 0 : i64, tpu.core_type = #tpu.core_type<tc>, window_params = [{transform_indices = @transform_0, window_bounds = array<i64: 3>}, {transform_indices = @transform_1, window_bounds = array<i64: 8, 16>}, {pipeline_mode = #tpu.pipeline_mode<synchronous>, transform_indices = @transform_2, window_bounds = array<i64: 6, 16, 32>}, {pipeline_mode = #tpu.pipeline_mode<synchronous>, transform_indices = @transform_3, window_bounds = array<i64: 6, 32, 8>}, {pipeline_mode = #tpu.pipeline_mode<synchronous>, transform_indices = @transform_4, window_bounds = array<i64: 6, 16, 32>}, {pipeline_mode = #tpu.pipeline_mode<synchronous>, transform_indices = @transform_5, window_bounds = array<i64: 6, 32, 8>}, {pipeline_mode = #tpu.pipeline_mode<synchronous>, transform_indices = @transform_6, window_bounds = array<i64: 6, 16, 32>}, {pipeline_mode = #tpu.pipeline_mode<synchronous>, transform_indices = @transform_7, window_bounds = array<i64: 6, 32, 8>}, {transform_indices = @transform_8, window_bounds = array<i64: 8, 8>}]} {
    %c0 = arith.constant 0 : index
    %c0_0 = arith.constant 0 : index
    %0 = vector.load %arg2[%c0, %c0_0] : memref<8x16xf32, #tpu.memory_space<vmem>>, vector<8x16xf32>
    %1 = math.cos %0 : vector<8x16xf32>
    %2 = math.sin %0 : vector<8x16xf32>
    %3 = arith.mulf %1, %1 : vector<8x16xf32>
    %4 = arith.mulf %2, %2 : vector<8x16xf32>
    %5 = arith.subf %3, %4 : vector<8x16xf32>
    %6 = arith.mulf %2, %1 : vector<8x16xf32>
    %7 = arith.mulf %1, %2 : vector<8x16xf32>
    %8 = arith.addf %6, %7 : vector<8x16xf32>
    %9 = arith.mulf %5, %1 : vector<8x16xf32>
    %10 = arith.mulf %8, %2 : vector<8x16xf32>
    %11 = arith.subf %9, %10 : vector<8x16xf32>
    %12 = arith.mulf %8, %1 : vector<8x16xf32>
    %13 = arith.mulf %5, %2 : vector<8x16xf32>
    %14 = arith.addf %12, %13 : vector<8x16xf32>
    %c0_1 = arith.constant 0 : index
    %c0_2 = arith.constant 0 : index
    %c0_3 = arith.constant 0 : index
    %15 = vector.load %arg3[%c0_1, %c0_2, %c0_3] : memref<6x16x32xf32, #tpu.memory_space<vmem>>, vector<1x16x32xf32>
    %16 = vector.shape_cast %15 : vector<1x16x32xf32> to vector<16x32xf32>
    %cst = arith.constant dense<0.000000e+00> : vector<8x32xf32>
    %17 = tpu.matmul %1, %16, %cst {dimension_numbers = #tpu.dot_dimension_numbers<[1], [0], [0], [1], [0, 0, 1, 1], [], []>} : vector<8x16xf32>, vector<16x32xf32>, vector<8x32xf32> -> vector<8x32xf32>
    %c1 = arith.constant 1 : index
    %c0_4 = arith.constant 0 : index
    %c0_5 = arith.constant 0 : index
    %18 = vector.load %arg3[%c1, %c0_4, %c0_5] : memref<6x16x32xf32, #tpu.memory_space<vmem>>, vector<1x16x32xf32>
    %19 = vector.shape_cast %18 : vector<1x16x32xf32> to vector<16x32xf32>
    %cst_6 = arith.constant dense<0.000000e+00> : vector<8x32xf32>
    %20 = tpu.matmul %2, %19, %cst_6 {dimension_numbers = #tpu.dot_dimension_numbers<[1], [0], [0], [1], [0, 0, 1, 1], [], []>} : vector<8x16xf32>, vector<16x32xf32>, vector<8x32xf32> -> vector<8x32xf32>
    %21 = arith.addf %17, %20 : vector<8x32xf32>
    %c2 = arith.constant 2 : index
    %c0_7 = arith.constant 0 : index
    %c0_8 = arith.constant 0 : index
    %22 = vector.load %arg3[%c2, %c0_7, %c0_8] : memref<6x16x32xf32, #tpu.memory_space<vmem>>, vector<1x16x32xf32>
    %23 = vector.shape_cast %22 : vector<1x16x32xf32> to vector<16x32xf32>
    %cst_9 = arith.constant dense<0.000000e+00> : vector<8x32xf32>
    %24 = tpu.matmul %5, %23, %cst_9 {dimension_numbers = #tpu.dot_dimension_numbers<[1], [0], [0], [1], [0, 0, 1, 1], [], []>} : vector<8x16xf32>, vector<16x32xf32>, vector<8x32xf32> -> vector<8x32xf32>
    %25 = arith.addf %21, %24 : vector<8x32xf32>
    %c3 = arith.constant 3 : index
    %c0_10 = arith.constant 0 : index
    %c0_11 = arith.constant 0 : index
    %26 = vector.load %arg3[%c3, %c0_10, %c0_11] : memref<6x16x32xf32, #tpu.memory_space<vmem>>, vector<1x16x32xf32>
    %27 = vector.shape_cast %26 : vector<1x16x32xf32> to vector<16x32xf32>
    %cst_12 = arith.constant dense<0.000000e+00> : vector<8x32xf32>
    %28 = tpu.matmul %8, %27, %cst_12 {dimension_numbers = #tpu.dot_dimension_numbers<[1], [0], [0], [1], [0, 0, 1, 1], [], []>} : vector<8x16xf32>, vector<16x32xf32>, vector<8x32xf32> -> vector<8x32xf32>
    %29 = arith.addf %25, %28 : vector<8x32xf32>
    %c4 = arith.constant 4 : index
    %c0_13 = arith.constant 0 : index
    %c0_14 = arith.constant 0 : index
    %30 = vector.load %arg3[%c4, %c0_13, %c0_14] : memref<6x16x32xf32, #tpu.memory_space<vmem>>, vector<1x16x32xf32>
    %31 = vector.shape_cast %30 : vector<1x16x32xf32> to vector<16x32xf32>
    %cst_15 = arith.constant dense<0.000000e+00> : vector<8x32xf32>
    %32 = tpu.matmul %11, %31, %cst_15 {dimension_numbers = #tpu.dot_dimension_numbers<[1], [0], [0], [1], [0, 0, 1, 1], [], []>} : vector<8x16xf32>, vector<16x32xf32>, vector<8x32xf32> -> vector<8x32xf32>
    %33 = arith.addf %29, %32 : vector<8x32xf32>
    %c5 = arith.constant 5 : index
    %c0_16 = arith.constant 0 : index
    %c0_17 = arith.constant 0 : index
    %34 = vector.load %arg3[%c5, %c0_16, %c0_17] : memref<6x16x32xf32, #tpu.memory_space<vmem>>, vector<1x16x32xf32>
    %35 = vector.shape_cast %34 : vector<1x16x32xf32> to vector<16x32xf32>
    %cst_18 = arith.constant dense<0.000000e+00> : vector<8x32xf32>
    %36 = tpu.matmul %14, %35, %cst_18 {dimension_numbers = #tpu.dot_dimension_numbers<[1], [0], [0], [1], [0, 0, 1, 1], [], []>} : vector<8x16xf32>, vector<16x32xf32>, vector<8x32xf32> -> vector<8x32xf32>
    %37 = arith.addf %33, %36 : vector<8x32xf32>
    %38 = math.cos %37 : vector<8x32xf32>
    %39 = math.sin %37 : vector<8x32xf32>
    %40 = arith.mulf %38, %38 : vector<8x32xf32>
    %41 = arith.mulf %39, %39 : vector<8x32xf32>
    %42 = arith.subf %40, %41 : vector<8x32xf32>
    %43 = arith.mulf %39, %38 : vector<8x32xf32>
    %44 = arith.mulf %38, %39 : vector<8x32xf32>
    %45 = arith.addf %43, %44 : vector<8x32xf32>
    %46 = arith.mulf %42, %38 : vector<8x32xf32>
    %47 = arith.mulf %45, %39 : vector<8x32xf32>
    %48 = arith.subf %46, %47 : vector<8x32xf32>
    %49 = arith.mulf %45, %38 : vector<8x32xf32>
    %50 = arith.mulf %42, %39 : vector<8x32xf32>
    %51 = arith.addf %49, %50 : vector<8x32xf32>
    %c0_19 = arith.constant 0 : index
    %c0_20 = arith.constant 0 : index
    %c0_21 = arith.constant 0 : index
    %52 = vector.load %arg4[%c0_19, %c0_20, %c0_21] : memref<6x32x8xf32, #tpu.memory_space<vmem>>, vector<1x32x8xf32>
    %53 = vector.shape_cast %52 : vector<1x32x8xf32> to vector<32x8xf32>
    %cst_22 = arith.constant dense<0.000000e+00> : vector<8x8xf32>
    %54 = tpu.matmul %38, %53, %cst_22 {dimension_numbers = #tpu.dot_dimension_numbers<[1], [0], [0], [1], [0, 0, 1, 1], [], []>} : vector<8x32xf32>, vector<32x8xf32>, vector<8x8xf32> -> vector<8x8xf32>
    %c1_23 = arith.constant 1 : index
    %c0_24 = arith.constant 0 : index
    %c0_25 = arith.constant 0 : index
    %55 = vector.load %arg4[%c1_23, %c0_24, %c0_25] : memref<6x32x8xf32, #tpu.memory_space<vmem>>, vector<1x32x8xf32>
    %56 = vector.shape_cast %55 : vector<1x32x8xf32> to vector<32x8xf32>
    %cst_26 = arith.constant dense<0.000000e+00> : vector<8x8xf32>
    %57 = tpu.matmul %39, %56, %cst_26 {dimension_numbers = #tpu.dot_dimension_numbers<[1], [0], [0], [1], [0, 0, 1, 1], [], []>} : vector<8x32xf32>, vector<32x8xf32>, vector<8x8xf32> -> vector<8x8xf32>
    %58 = arith.addf %54, %57 : vector<8x8xf32>
    %c2_27 = arith.constant 2 : index
    %c0_28 = arith.constant 0 : index
    %c0_29 = arith.constant 0 : index
    %59 = vector.load %arg4[%c2_27, %c0_28, %c0_29] : memref<6x32x8xf32, #tpu.memory_space<vmem>>, vector<1x32x8xf32>
    %60 = vector.shape_cast %59 : vector<1x32x8xf32> to vector<32x8xf32>
    %cst_30 = arith.constant dense<0.000000e+00> : vector<8x8xf32>
    %61 = tpu.matmul %42, %60, %cst_30 {dimension_numbers = #tpu.dot_dimension_numbers<[1], [0], [0], [1], [0, 0, 1, 1], [], []>} : vector<8x32xf32>, vector<32x8xf32>, vector<8x8xf32> -> vector<8x8xf32>
    %62 = arith.addf %58, %61 : vector<8x8xf32>
    %c3_31 = arith.constant 3 : index
    %c0_32 = arith.constant 0 : index
    %c0_33 = arith.constant 0 : index
    %63 = vector.load %arg4[%c3_31, %c0_32, %c0_33] : memref<6x32x8xf32, #tpu.memory_space<vmem>>, vector<1x32x8xf32>
    %64 = vector.shape_cast %63 : vector<1x32x8xf32> to vector<32x8xf32>
    %cst_34 = arith.constant dense<0.000000e+00> : vector<8x8xf32>
    %65 = tpu.matmul %45, %64, %cst_34 {dimension_numbers = #tpu.dot_dimension_numbers<[1], [0], [0], [1], [0, 0, 1, 1], [], []>} : vector<8x32xf32>, vector<32x8xf32>, vector<8x8xf32> -> vector<8x8xf32>
    %66 = arith.addf %62, %65 : vector<8x8xf32>
    %c4_35 = arith.constant 4 : index
    %c0_36 = arith.constant 0 : index
    %c0_37 = arith.constant 0 : index
    %67 = vector.load %arg4[%c4_35, %c0_36, %c0_37] : memref<6x32x8xf32, #tpu.memory_space<vmem>>, vector<1x32x8xf32>
    %68 = vector.shape_cast %67 : vector<1x32x8xf32> to vector<32x8xf32>
    %cst_38 = arith.constant dense<0.000000e+00> : vector<8x8xf32>
    %69 = tpu.matmul %48, %68, %cst_38 {dimension_numbers = #tpu.dot_dimension_numbers<[1], [0], [0], [1], [0, 0, 1, 1], [], []>} : vector<8x32xf32>, vector<32x8xf32>, vector<8x8xf32> -> vector<8x8xf32>
    %70 = arith.addf %66, %69 : vector<8x8xf32>
    %c5_39 = arith.constant 5 : index
    %c0_40 = arith.constant 0 : index
    %c0_41 = arith.constant 0 : index
    %71 = vector.load %arg4[%c5_39, %c0_40, %c0_41] : memref<6x32x8xf32, #tpu.memory_space<vmem>>, vector<1x32x8xf32>
    %72 = vector.shape_cast %71 : vector<1x32x8xf32> to vector<32x8xf32>
    %cst_42 = arith.constant dense<0.000000e+00> : vector<8x8xf32>
    %73 = tpu.matmul %51, %72, %cst_42 {dimension_numbers = #tpu.dot_dimension_numbers<[1], [0], [0], [1], [0, 0, 1, 1], [], []>} : vector<8x32xf32>, vector<32x8xf32>, vector<8x8xf32> -> vector<8x8xf32>
    %74 = arith.addf %70, %73 : vector<8x8xf32>
    %c0_43 = arith.constant 0 : index
    %75 = memref.load %arg1[%c0_43] : memref<3xf32, #tpu.memory_space<smem>>
    %76 = vector.broadcast %75 : f32 to vector<8x8xf32>
    %77 = arith.mulf %76, %74 : vector<8x8xf32>
    %cst_44 = arith.constant -1.000000e+00 : f32
    %78 = vector.broadcast %cst_44 : f32 to vector<8x16xf32>
    %79 = arith.subf %0, %78 : vector<8x16xf32>
    %cst_45 = arith.constant 2.500000e+00 : f32
    %80 = vector.broadcast %cst_45 : f32 to vector<8x16xf32>
    %81 = arith.mulf %79, %80 : vector<8x16xf32>
    %82 = arith.mulf %81, %81 : vector<8x16xf32>
    %cst_46 = arith.constant 0.000000e+00 : f32
    %83 = vector.broadcast %cst_46 : f32 to vector<8x16xf32>
    %84 = arith.subf %83, %82 : vector<8x16xf32>
    %85 = math.exp %84 : vector<8x16xf32>
    %cst_47 = arith.constant 2.000000e+00 : f32
    %86 = vector.broadcast %cst_47 : f32 to vector<8x16xf32>
    %87 = arith.mulf %86, %81 : vector<8x16xf32>
    %88 = math.exp %87 : vector<8x16xf32>
    %cst_48 = arith.constant 0.36787945 : f32
    %89 = vector.broadcast %cst_48 : f32 to vector<8x16xf32>
    %90 = arith.mulf %88, %89 : vector<8x16xf32>
    %91 = arith.mulf %85, %90 : vector<8x16xf32>
    %cst_49 = arith.constant 0.0497870669 : f32
    %92 = vector.broadcast %cst_49 : f32 to vector<8x16xf32>
    %93 = arith.mulf %88, %92 : vector<8x16xf32>
    %94 = arith.mulf %91, %93 : vector<8x16xf32>
    %cst_50 = arith.constant 0.006737947 : f32
    %95 = vector.broadcast %cst_50 : f32 to vector<8x16xf32>
    %96 = arith.mulf %88, %95 : vector<8x16xf32>
    %97 = arith.mulf %94, %96 : vector<8x16xf32>
    %cst_51 = arith.constant 9.118820e-04 : f32
    %98 = vector.broadcast %cst_51 : f32 to vector<8x16xf32>
    %99 = arith.mulf %88, %98 : vector<8x16xf32>
    %100 = arith.mulf %97, %99 : vector<8x16xf32>
    %cst_52 = arith.constant 1.23409802E-4 : f32
    %101 = vector.broadcast %cst_52 : f32 to vector<8x16xf32>
    %102 = arith.mulf %88, %101 : vector<8x16xf32>
    %103 = arith.mulf %100, %102 : vector<8x16xf32>
    %c0_53 = arith.constant 0 : index
    %c0_54 = arith.constant 0 : index
    %c0_55 = arith.constant 0 : index
    %104 = vector.load %arg5[%c0_53, %c0_54, %c0_55] : memref<6x16x32xf32, #tpu.memory_space<vmem>>, vector<1x16x32xf32>
    %105 = vector.shape_cast %104 : vector<1x16x32xf32> to vector<16x32xf32>
    %cst_56 = arith.constant dense<0.000000e+00> : vector<8x32xf32>
    %106 = tpu.matmul %85, %105, %cst_56 {dimension_numbers = #tpu.dot_dimension_numbers<[1], [0], [0], [1], [0, 0, 1, 1], [], []>} : vector<8x16xf32>, vector<16x32xf32>, vector<8x32xf32> -> vector<8x32xf32>
    %c1_57 = arith.constant 1 : index
    %c0_58 = arith.constant 0 : index
    %c0_59 = arith.constant 0 : index
    %107 = vector.load %arg5[%c1_57, %c0_58, %c0_59] : memref<6x16x32xf32, #tpu.memory_space<vmem>>, vector<1x16x32xf32>
    %108 = vector.shape_cast %107 : vector<1x16x32xf32> to vector<16x32xf32>
    %cst_60 = arith.constant dense<0.000000e+00> : vector<8x32xf32>
    %109 = tpu.matmul %91, %108, %cst_60 {dimension_numbers = #tpu.dot_dimension_numbers<[1], [0], [0], [1], [0, 0, 1, 1], [], []>} : vector<8x16xf32>, vector<16x32xf32>, vector<8x32xf32> -> vector<8x32xf32>
    %110 = arith.addf %106, %109 : vector<8x32xf32>
    %c2_61 = arith.constant 2 : index
    %c0_62 = arith.constant 0 : index
    %c0_63 = arith.constant 0 : index
    %111 = vector.load %arg5[%c2_61, %c0_62, %c0_63] : memref<6x16x32xf32, #tpu.memory_space<vmem>>, vector<1x16x32xf32>
    %112 = vector.shape_cast %111 : vector<1x16x32xf32> to vector<16x32xf32>
    %cst_64 = arith.constant dense<0.000000e+00> : vector<8x32xf32>
    %113 = tpu.matmul %94, %112, %cst_64 {dimension_numbers = #tpu.dot_dimension_numbers<[1], [0], [0], [1], [0, 0, 1, 1], [], []>} : vector<8x16xf32>, vector<16x32xf32>, vector<8x32xf32> -> vector<8x32xf32>
    %114 = arith.addf %110, %113 : vector<8x32xf32>
    %c3_65 = arith.constant 3 : index
    %c0_66 = arith.constant 0 : index
    %c0_67 = arith.constant 0 : index
    %115 = vector.load %arg5[%c3_65, %c0_66, %c0_67] : memref<6x16x32xf32, #tpu.memory_space<vmem>>, vector<1x16x32xf32>
    %116 = vector.shape_cast %115 : vector<1x16x32xf32> to vector<16x32xf32>
    %cst_68 = arith.constant dense<0.000000e+00> : vector<8x32xf32>
    %117 = tpu.matmul %97, %116, %cst_68 {dimension_numbers = #tpu.dot_dimension_numbers<[1], [0], [0], [1], [0, 0, 1, 1], [], []>} : vector<8x16xf32>, vector<16x32xf32>, vector<8x32xf32> -> vector<8x32xf32>
    %118 = arith.addf %114, %117 : vector<8x32xf32>
    %c4_69 = arith.constant 4 : index
    %c0_70 = arith.constant 0 : index
    %c0_71 = arith.constant 0 : index
    %119 = vector.load %arg5[%c4_69, %c0_70, %c0_71] : memref<6x16x32xf32, #tpu.memory_space<vmem>>, vector<1x16x32xf32>
    %120 = vector.shape_cast %119 : vector<1x16x32xf32> to vector<16x32xf32>
    %cst_72 = arith.constant dense<0.000000e+00> : vector<8x32xf32>
    %121 = tpu.matmul %100, %120, %cst_72 {dimension_numbers = #tpu.dot_dimension_numbers<[1], [0], [0], [1], [0, 0, 1, 1], [], []>} : vector<8x16xf32>, vector<16x32xf32>, vector<8x32xf32> -> vector<8x32xf32>
    %122 = arith.addf %118, %121 : vector<8x32xf32>
    %c5_73 = arith.constant 5 : index
    %c0_74 = arith.constant 0 : index
    %c0_75 = arith.constant 0 : index
    %123 = vector.load %arg5[%c5_73, %c0_74, %c0_75] : memref<6x16x32xf32, #tpu.memory_space<vmem>>, vector<1x16x32xf32>
    %124 = vector.shape_cast %123 : vector<1x16x32xf32> to vector<16x32xf32>
    %cst_76 = arith.constant dense<0.000000e+00> : vector<8x32xf32>
    %125 = tpu.matmul %103, %124, %cst_76 {dimension_numbers = #tpu.dot_dimension_numbers<[1], [0], [0], [1], [0, 0, 1, 1], [], []>} : vector<8x16xf32>, vector<16x32xf32>, vector<8x32xf32> -> vector<8x32xf32>
    %126 = arith.addf %122, %125 : vector<8x32xf32>
    %cst_77 = arith.constant -1.000000e+00 : f32
    %127 = vector.broadcast %cst_77 : f32 to vector<8x32xf32>
    %128 = arith.subf %126, %127 : vector<8x32xf32>
    %cst_78 = arith.constant 2.500000e+00 : f32
    %129 = vector.broadcast %cst_78 : f32 to vector<8x32xf32>
    %130 = arith.mulf %128, %129 : vector<8x32xf32>
    %131 = arith.mulf %130, %130 : vector<8x32xf32>
    %cst_79 = arith.constant 0.000000e+00 : f32
    %132 = vector.broadcast %cst_79 : f32 to vector<8x32xf32>
    %133 = arith.subf %132, %131 : vector<8x32xf32>
    %134 = math.exp %133 : vector<8x32xf32>
    %cst_80 = arith.constant 2.000000e+00 : f32
    %135 = vector.broadcast %cst_80 : f32 to vector<8x32xf32>
    %136 = arith.mulf %135, %130 : vector<8x32xf32>
    %137 = math.exp %136 : vector<8x32xf32>
    %cst_81 = arith.constant 0.36787945 : f32
    %138 = vector.broadcast %cst_81 : f32 to vector<8x32xf32>
    %139 = arith.mulf %137, %138 : vector<8x32xf32>
    %140 = arith.mulf %134, %139 : vector<8x32xf32>
    %cst_82 = arith.constant 0.0497870669 : f32
    %141 = vector.broadcast %cst_82 : f32 to vector<8x32xf32>
    %142 = arith.mulf %137, %141 : vector<8x32xf32>
    %143 = arith.mulf %140, %142 : vector<8x32xf32>
    %cst_83 = arith.constant 0.006737947 : f32
    %144 = vector.broadcast %cst_83 : f32 to vector<8x32xf32>
    %145 = arith.mulf %137, %144 : vector<8x32xf32>
    %146 = arith.mulf %143, %145 : vector<8x32xf32>
    %cst_84 = arith.constant 9.118820e-04 : f32
    %147 = vector.broadcast %cst_84 : f32 to vector<8x32xf32>
    %148 = arith.mulf %137, %147 : vector<8x32xf32>
    %149 = arith.mulf %146, %148 : vector<8x32xf32>
    %cst_85 = arith.constant 1.23409802E-4 : f32
    %150 = vector.broadcast %cst_85 : f32 to vector<8x32xf32>
    %151 = arith.mulf %137, %150 : vector<8x32xf32>
    %152 = arith.mulf %149, %151 : vector<8x32xf32>
    %c0_86 = arith.constant 0 : index
    %c0_87 = arith.constant 0 : index
    %c0_88 = arith.constant 0 : index
    %153 = vector.load %arg6[%c0_86, %c0_87, %c0_88] : memref<6x32x8xf32, #tpu.memory_space<vmem>>, vector<1x32x8xf32>
    %154 = vector.shape_cast %153 : vector<1x32x8xf32> to vector<32x8xf32>
    %cst_89 = arith.constant dense<0.000000e+00> : vector<8x8xf32>
    %155 = tpu.matmul %134, %154, %cst_89 {dimension_numbers = #tpu.dot_dimension_numbers<[1], [0], [0], [1], [0, 0, 1, 1], [], []>} : vector<8x32xf32>, vector<32x8xf32>, vector<8x8xf32> -> vector<8x8xf32>
    %c1_90 = arith.constant 1 : index
    %c0_91 = arith.constant 0 : index
    %c0_92 = arith.constant 0 : index
    %156 = vector.load %arg6[%c1_90, %c0_91, %c0_92] : memref<6x32x8xf32, #tpu.memory_space<vmem>>, vector<1x32x8xf32>
    %157 = vector.shape_cast %156 : vector<1x32x8xf32> to vector<32x8xf32>
    %cst_93 = arith.constant dense<0.000000e+00> : vector<8x8xf32>
    %158 = tpu.matmul %140, %157, %cst_93 {dimension_numbers = #tpu.dot_dimension_numbers<[1], [0], [0], [1], [0, 0, 1, 1], [], []>} : vector<8x32xf32>, vector<32x8xf32>, vector<8x8xf32> -> vector<8x8xf32>
    %159 = arith.addf %155, %158 : vector<8x8xf32>
    %c2_94 = arith.constant 2 : index
    %c0_95 = arith.constant 0 : index
    %c0_96 = arith.constant 0 : index
    %160 = vector.load %arg6[%c2_94, %c0_95, %c0_96] : memref<6x32x8xf32, #tpu.memory_space<vmem>>, vector<1x32x8xf32>
    %161 = vector.shape_cast %160 : vector<1x32x8xf32> to vector<32x8xf32>
    %cst_97 = arith.constant dense<0.000000e+00> : vector<8x8xf32>
    %162 = tpu.matmul %143, %161, %cst_97 {dimension_numbers = #tpu.dot_dimension_numbers<[1], [0], [0], [1], [0, 0, 1, 1], [], []>} : vector<8x32xf32>, vector<32x8xf32>, vector<8x8xf32> -> vector<8x8xf32>
    %163 = arith.addf %159, %162 : vector<8x8xf32>
    %c3_98 = arith.constant 3 : index
    %c0_99 = arith.constant 0 : index
    %c0_100 = arith.constant 0 : index
    %164 = vector.load %arg6[%c3_98, %c0_99, %c0_100] : memref<6x32x8xf32, #tpu.memory_space<vmem>>, vector<1x32x8xf32>
    %165 = vector.shape_cast %164 : vector<1x32x8xf32> to vector<32x8xf32>
    %cst_101 = arith.constant dense<0.000000e+00> : vector<8x8xf32>
    %166 = tpu.matmul %146, %165, %cst_101 {dimension_numbers = #tpu.dot_dimension_numbers<[1], [0], [0], [1], [0, 0, 1, 1], [], []>} : vector<8x32xf32>, vector<32x8xf32>, vector<8x8xf32> -> vector<8x8xf32>
    %167 = arith.addf %163, %166 : vector<8x8xf32>
    %c4_102 = arith.constant 4 : index
    %c0_103 = arith.constant 0 : index
    %c0_104 = arith.constant 0 : index
    %168 = vector.load %arg6[%c4_102, %c0_103, %c0_104] : memref<6x32x8xf32, #tpu.memory_space<vmem>>, vector<1x32x8xf32>
    %169 = vector.shape_cast %168 : vector<1x32x8xf32> to vector<32x8xf32>
    %cst_105 = arith.constant dense<0.000000e+00> : vector<8x8xf32>
    %170 = tpu.matmul %149, %169, %cst_105 {dimension_numbers = #tpu.dot_dimension_numbers<[1], [0], [0], [1], [0, 0, 1, 1], [], []>} : vector<8x32xf32>, vector<32x8xf32>, vector<8x8xf32> -> vector<8x8xf32>
    %171 = arith.addf %167, %170 : vector<8x8xf32>
    %c5_106 = arith.constant 5 : index
    %c0_107 = arith.constant 0 : index
    %c0_108 = arith.constant 0 : index
    %172 = vector.load %arg6[%c5_106, %c0_107, %c0_108] : memref<6x32x8xf32, #tpu.memory_space<vmem>>, vector<1x32x8xf32>
    %173 = vector.shape_cast %172 : vector<1x32x8xf32> to vector<32x8xf32>
    %cst_109 = arith.constant dense<0.000000e+00> : vector<8x8xf32>
    %174 = tpu.matmul %152, %173, %cst_109 {dimension_numbers = #tpu.dot_dimension_numbers<[1], [0], [0], [1], [0, 0, 1, 1], [], []>} : vector<8x32xf32>, vector<32x8xf32>, vector<8x8xf32> -> vector<8x8xf32>
    %175 = arith.addf %171, %174 : vector<8x8xf32>
    %c1_110 = arith.constant 1 : index
    %176 = memref.load %arg1[%c1_110] : memref<3xf32, #tpu.memory_space<smem>>
    %177 = vector.broadcast %176 : f32 to vector<8x8xf32>
    %178 = arith.mulf %177, %175 : vector<8x8xf32>
    %179 = arith.addf %77, %178 : vector<8x8xf32>
    %cst_111 = arith.constant 1.000000e+00 : f32
    %180 = vector.broadcast %cst_111 : f32 to vector<8x16xf32>
    %181 = arith.mulf %0, %0 : vector<8x16xf32>
    %182 = arith.mulf %181, %0 : vector<8x16xf32>
    %183 = arith.mulf %182, %0 : vector<8x16xf32>
    %184 = arith.mulf %183, %0 : vector<8x16xf32>
    %c0_112 = arith.constant 0 : index
    %c0_113 = arith.constant 0 : index
    %c0_114 = arith.constant 0 : index
    %185 = vector.load %arg7[%c0_112, %c0_113, %c0_114] : memref<6x16x32xf32, #tpu.memory_space<vmem>>, vector<1x16x32xf32>
    %186 = vector.shape_cast %185 : vector<1x16x32xf32> to vector<16x32xf32>
    %cst_115 = arith.constant dense<0.000000e+00> : vector<8x32xf32>
    %187 = tpu.matmul %180, %186, %cst_115 {dimension_numbers = #tpu.dot_dimension_numbers<[1], [0], [0], [1], [0, 0, 1, 1], [], []>} : vector<8x16xf32>, vector<16x32xf32>, vector<8x32xf32> -> vector<8x32xf32>
    %c1_116 = arith.constant 1 : index
    %c0_117 = arith.constant 0 : index
    %c0_118 = arith.constant 0 : index
    %188 = vector.load %arg7[%c1_116, %c0_117, %c0_118] : memref<6x16x32xf32, #tpu.memory_space<vmem>>, vector<1x16x32xf32>
    %189 = vector.shape_cast %188 : vector<1x16x32xf32> to vector<16x32xf32>
    %cst_119 = arith.constant dense<0.000000e+00> : vector<8x32xf32>
    %190 = tpu.matmul %0, %189, %cst_119 {dimension_numbers = #tpu.dot_dimension_numbers<[1], [0], [0], [1], [0, 0, 1, 1], [], []>} : vector<8x16xf32>, vector<16x32xf32>, vector<8x32xf32> -> vector<8x32xf32>
    %191 = arith.addf %187, %190 : vector<8x32xf32>
    %c2_120 = arith.constant 2 : index
    %c0_121 = arith.constant 0 : index
    %c0_122 = arith.constant 0 : index
    %192 = vector.load %arg7[%c2_120, %c0_121, %c0_122] : memref<6x16x32xf32, #tpu.memory_space<vmem>>, vector<1x16x32xf32>
    %193 = vector.shape_cast %192 : vector<1x16x32xf32> to vector<16x32xf32>
    %cst_123 = arith.constant dense<0.000000e+00> : vector<8x32xf32>
    %194 = tpu.matmul %181, %193, %cst_123 {dimension_numbers = #tpu.dot_dimension_numbers<[1], [0], [0], [1], [0, 0, 1, 1], [], []>} : vector<8x16xf32>, vector<16x32xf32>, vector<8x32xf32> -> vector<8x32xf32>
    %195 = arith.addf %191, %194 : vector<8x32xf32>
    %c3_124 = arith.constant 3 : index
    %c0_125 = arith.constant 0 : index
    %c0_126 = arith.constant 0 : index
    %196 = vector.load %arg7[%c3_124, %c0_125, %c0_126] : memref<6x16x32xf32, #tpu.memory_space<vmem>>, vector<1x16x32xf32>
    %197 = vector.shape_cast %196 : vector<1x16x32xf32> to vector<16x32xf32>
    %cst_127 = arith.constant dense<0.000000e+00> : vector<8x32xf32>
    %198 = tpu.matmul %182, %197, %cst_127 {dimension_numbers = #tpu.dot_dimension_numbers<[1], [0], [0], [1], [0, 0, 1, 1], [], []>} : vector<8x16xf32>, vector<16x32xf32>, vector<8x32xf32> -> vector<8x32xf32>
    %199 = arith.addf %195, %198 : vector<8x32xf32>
    %c4_128 = arith.constant 4 : index
    %c0_129 = arith.constant 0 : index
    %c0_130 = arith.constant 0 : index
    %200 = vector.load %arg7[%c4_128, %c0_129, %c0_130] : memref<6x16x32xf32, #tpu.memory_space<vmem>>, vector<1x16x32xf32>
    %201 = vector.shape_cast %200 : vector<1x16x32xf32> to vector<16x32xf32>
    %cst_131 = arith.constant dense<0.000000e+00> : vector<8x32xf32>
    %202 = tpu.matmul %183, %201, %cst_131 {dimension_numbers = #tpu.dot_dimension_numbers<[1], [0], [0], [1], [0, 0, 1, 1], [], []>} : vector<8x16xf32>, vector<16x32xf32>, vector<8x32xf32> -> vector<8x32xf32>
    %203 = arith.addf %199, %202 : vector<8x32xf32>
    %c5_132 = arith.constant 5 : index
    %c0_133 = arith.constant 0 : index
    %c0_134 = arith.constant 0 : index
    %204 = vector.load %arg7[%c5_132, %c0_133, %c0_134] : memref<6x16x32xf32, #tpu.memory_space<vmem>>, vector<1x16x32xf32>
    %205 = vector.shape_cast %204 : vector<1x16x32xf32> to vector<16x32xf32>
    %cst_135 = arith.constant dense<0.000000e+00> : vector<8x32xf32>
    %206 = tpu.matmul %184, %205, %cst_135 {dimension_numbers = #tpu.dot_dimension_numbers<[1], [0], [0], [1], [0, 0, 1, 1], [], []>} : vector<8x16xf32>, vector<16x32xf32>, vector<8x32xf32> -> vector<8x32xf32>
    %207 = arith.addf %203, %206 : vector<8x32xf32>
    %cst_136 = arith.constant 1.000000e+00 : f32
    %208 = vector.broadcast %cst_136 : f32 to vector<8x32xf32>
    %209 = arith.mulf %207, %207 : vector<8x32xf32>
    %210 = arith.mulf %209, %207 : vector<8x32xf32>
    %211 = arith.mulf %210, %207 : vector<8x32xf32>
    %212 = arith.mulf %211, %207 : vector<8x32xf32>
    %c0_137 = arith.constant 0 : index
    %c0_138 = arith.constant 0 : index
    %c0_139 = arith.constant 0 : index
    %213 = vector.load %arg8[%c0_137, %c0_138, %c0_139] : memref<6x32x8xf32, #tpu.memory_space<vmem>>, vector<1x32x8xf32>
    %214 = vector.shape_cast %213 : vector<1x32x8xf32> to vector<32x8xf32>
    %cst_140 = arith.constant dense<0.000000e+00> : vector<8x8xf32>
    %215 = tpu.matmul %208, %214, %cst_140 {dimension_numbers = #tpu.dot_dimension_numbers<[1], [0], [0], [1], [0, 0, 1, 1], [], []>} : vector<8x32xf32>, vector<32x8xf32>, vector<8x8xf32> -> vector<8x8xf32>
    %c1_141 = arith.constant 1 : index
    %c0_142 = arith.constant 0 : index
    %c0_143 = arith.constant 0 : index
    %216 = vector.load %arg8[%c1_141, %c0_142, %c0_143] : memref<6x32x8xf32, #tpu.memory_space<vmem>>, vector<1x32x8xf32>
    %217 = vector.shape_cast %216 : vector<1x32x8xf32> to vector<32x8xf32>
    %cst_144 = arith.constant dense<0.000000e+00> : vector<8x8xf32>
    %218 = tpu.matmul %207, %217, %cst_144 {dimension_numbers = #tpu.dot_dimension_numbers<[1], [0], [0], [1], [0, 0, 1, 1], [], []>} : vector<8x32xf32>, vector<32x8xf32>, vector<8x8xf32> -> vector<8x8xf32>
    %219 = arith.addf %215, %218 : vector<8x8xf32>
    %c2_145 = arith.constant 2 : index
    %c0_146 = arith.constant 0 : index
    %c0_147 = arith.constant 0 : index
    %220 = vector.load %arg8[%c2_145, %c0_146, %c0_147] : memref<6x32x8xf32, #tpu.memory_space<vmem>>, vector<1x32x8xf32>
    %221 = vector.shape_cast %220 : vector<1x32x8xf32> to vector<32x8xf32>
    %cst_148 = arith.constant dense<0.000000e+00> : vector<8x8xf32>
    %222 = tpu.matmul %209, %221, %cst_148 {dimension_numbers = #tpu.dot_dimension_numbers<[1], [0], [0], [1], [0, 0, 1, 1], [], []>} : vector<8x32xf32>, vector<32x8xf32>, vector<8x8xf32> -> vector<8x8xf32>
    %223 = arith.addf %219, %222 : vector<8x8xf32>
    %c3_149 = arith.constant 3 : index
    %c0_150 = arith.constant 0 : index
    %c0_151 = arith.constant 0 : index
    %224 = vector.load %arg8[%c3_149, %c0_150, %c0_151] : memref<6x32x8xf32, #tpu.memory_space<vmem>>, vector<1x32x8xf32>
    %225 = vector.shape_cast %224 : vector<1x32x8xf32> to vector<32x8xf32>
    %cst_152 = arith.constant dense<0.000000e+00> : vector<8x8xf32>
    %226 = tpu.matmul %210, %225, %cst_152 {dimension_numbers = #tpu.dot_dimension_numbers<[1], [0], [0], [1], [0, 0, 1, 1], [], []>} : vector<8x32xf32>, vector<32x8xf32>, vector<8x8xf32> -> vector<8x8xf32>
    %227 = arith.addf %223, %226 : vector<8x8xf32>
    %c4_153 = arith.constant 4 : index
    %c0_154 = arith.constant 0 : index
    %c0_155 = arith.constant 0 : index
    %228 = vector.load %arg8[%c4_153, %c0_154, %c0_155] : memref<6x32x8xf32, #tpu.memory_space<vmem>>, vector<1x32x8xf32>
    %229 = vector.shape_cast %228 : vector<1x32x8xf32> to vector<32x8xf32>
    %cst_156 = arith.constant dense<0.000000e+00> : vector<8x8xf32>
    %230 = tpu.matmul %211, %229, %cst_156 {dimension_numbers = #tpu.dot_dimension_numbers<[1], [0], [0], [1], [0, 0, 1, 1], [], []>} : vector<8x32xf32>, vector<32x8xf32>, vector<8x8xf32> -> vector<8x8xf32>
    %231 = arith.addf %227, %230 : vector<8x8xf32>
    %c5_157 = arith.constant 5 : index
    %c0_158 = arith.constant 0 : index
    %c0_159 = arith.constant 0 : index
    %232 = vector.load %arg8[%c5_157, %c0_158, %c0_159] : memref<6x32x8xf32, #tpu.memory_space<vmem>>, vector<1x32x8xf32>
    %233 = vector.shape_cast %232 : vector<1x32x8xf32> to vector<32x8xf32>
    %cst_160 = arith.constant dense<0.000000e+00> : vector<8x8xf32>
    %234 = tpu.matmul %212, %233, %cst_160 {dimension_numbers = #tpu.dot_dimension_numbers<[1], [0], [0], [1], [0, 0, 1, 1], [], []>} : vector<8x32xf32>, vector<32x8xf32>, vector<8x8xf32> -> vector<8x8xf32>
    %235 = arith.addf %231, %234 : vector<8x8xf32>
    %c2_161 = arith.constant 2 : index
    %236 = memref.load %arg1[%c2_161] : memref<3xf32, #tpu.memory_space<smem>>
    %237 = vector.broadcast %236 : f32 to vector<8x8xf32>
    %238 = arith.mulf %237, %235 : vector<8x8xf32>
    %239 = arith.addf %179, %238 : vector<8x8xf32>
    %c0_162 = arith.constant 0 : index
    %c0_163 = arith.constant 0 : index
    %240 = vector.load %arg9[%c0_162, %c0_163] : memref<8x8xf32, #tpu.memory_space<vmem>>, vector<8x8xf32>
    tpu.vector_store %arg9[%c0_162, %c0_163], %239 {strides = array<i32>} : memref<8x8xf32, #tpu.memory_space<vmem>>, vector<8x8xf32>,
    return
  }
  func.func @transform_0(%arg0: i32) -> i32 {
    %c0_i32 = arith.constant 0 : i32
    %c0_i32_0 = arith.constant 0 : i32
    return %c0_i32 : i32
  }
  func.func @transform_1(%arg0: i32) -> (i32, i32) {
    %c0_i32 = arith.constant 0 : i32
    %c0_i32_0 = arith.constant 0 : i32
    return %arg0, %c0_i32 : i32, i32
  }
  func.func @transform_2(%arg0: i32) -> (i32, i32, i32) {
    %c0_i32 = arith.constant 0 : i32
    %c0_i32_0 = arith.constant 0 : i32
    %c0_i32_1 = arith.constant 0 : i32
    %c0_i32_2 = arith.constant 0 : i32
    return %c0_i32, %c0_i32_0, %c0_i32_1 : i32, i32, i32
  }
  func.func @transform_3(%arg0: i32) -> (i32, i32, i32) {
    %c0_i32 = arith.constant 0 : i32
    %c0_i32_0 = arith.constant 0 : i32
    %c0_i32_1 = arith.constant 0 : i32
    %c0_i32_2 = arith.constant 0 : i32
    return %c0_i32, %c0_i32_0, %c0_i32_1 : i32, i32, i32
  }
  func.func @transform_4(%arg0: i32) -> (i32, i32, i32) {
    %c0_i32 = arith.constant 0 : i32
    %c0_i32_0 = arith.constant 0 : i32
    %c0_i32_1 = arith.constant 0 : i32
    %c0_i32_2 = arith.constant 0 : i32
    return %c0_i32, %c0_i32_0, %c0_i32_1 : i32, i32, i32
  }
  func.func @transform_5(%arg0: i32) -> (i32, i32, i32) {
    %c0_i32 = arith.constant 0 : i32
    %c0_i32_0 = arith.constant 0 : i32
    %c0_i32_1 = arith.constant 0 : i32
    %c0_i32_2 = arith.constant 0 : i32
    return %c0_i32, %c0_i32_0, %c0_i32_1 : i32, i32, i32
  }
  func.func @transform_6(%arg0: i32) -> (i32, i32, i32) {
    %c0_i32 = arith.constant 0 : i32
    %c0_i32_0 = arith.constant 0 : i32
    %c0_i32_1 = arith.constant 0 : i32
    %c0_i32_2 = arith.constant 0 : i32
    return %c0_i32, %c0_i32_0, %c0_i32_1 : i32, i32, i32
  }
  func.func @transform_7(%arg0: i32) -> (i32, i32, i32) {
    %c0_i32 = arith.constant 0 : i32
    %c0_i32_0 = arith.constant 0 : i32
    %c0_i32_1 = arith.constant 0 : i32
    %c0_i32_2 = arith.constant 0 : i32
    return %c0_i32, %c0_i32_0, %c0_i32_1 : i32, i32, i32
  }
  func.func @transform_8(%arg0: i32) -> (i32, i32) {
    %c0_i32 = arith.constant 0 : i32
    %c0_i32_0 = arith.constant 0 : i32
    return %arg0, %c0_i32 : i32, i32
  }
}

</mosaic_0001>

<bundles_post_ra>
// kernel: tpu_custom_call.1
= control target key start
LH: loop header
LB: loop body
LE: loop exit
PB: predicated region body
PF: predicated region fallthrough
CT: control target
= control target key end

     0   :  { %13 = vsyncpa [#allocation4], 0  ;;  %s4925_s0 = inlined_call_operand.vmem [shape: f32[3], index: 0, kind: input, shape index: {}]   ;;  %s4926_s1 = inlined_call_operand.vmem [shape: f32[8,16], index: 1, kind: input, shape index: {}]   ;;  %s4927_s2 = inlined_call_operand.vmem [shape: f32[6,16,32], index: 2, kind: input, shape index: {}]   ;;  %s4928_s3 = inlined_call_operand.vmem [shape: f32[6,32,8], index: 3, kind: input, shape index: {}]   ;;  %s4929_s4 = inlined_call_operand.vmem [shape: f32[6,16,32], index: 4, kind: input, shape index: {}]   ;;  %s4930_s5 = inlined_call_operand.vmem [shape: f32[6,32,8], index: 5, kind: input, shape index: {}]   ;;  %s4931_s6 = inlined_call_operand.vmem [shape: f32[6,16,32], index: 6, kind: input, shape index: {}]   ;;  %s4932_s7 = inlined_call_operand.vmem [shape: f32[6,32,8], index: 7, kind: input, shape index: {}]   ;;  %s4933_s8 = inlined_call_operand.hbm [shape: f32[8,8], index: 8, kind: output, shape index: {}]  }
   0x1   :  { %14 = vsyncpa [#allocation3], 0  ;;  %s21_s29 = sshll.u32 %s4925_s0, 4  ;;  %s22_s29 = int_to_ptr.vmem [resolvable:$true] %s21_s29 }
   0x2   :  { %s4206_s30 = scalar_lea.vmem %s22_s29, 16  ;;  %p4211_p1 = scmp.lt.s32.totalorder %s22_s29, %s22_s29 }
   0x3   :  { %p4207_p0 = scmp.ne.s32.totalorder %s22_s29, %s4206_s30  ;;  %p4212_p2 = scmp.lt.s32.totalorder %s4206_s30, %s4206_s30 }
   0x5   :  { %p4213_p3 = por %p4212_p2, %p4211_p1 }
   0x7   :  { %p4214_p4 = pnand %p4213_p3, %p4207_p0 }
   0x9   :  { %4217 = shalt.err (!%p4214_p4)
}
   0xa   :  { %s4244_s9 = smov [#allocation2]  }
   0xb   :  { %24 = dma.vmem_to_smem %s22_s29, 16, %s4244_s9, [#allocation4]  }
   0xc   :  { %4240 = dma.done.wait [#allocation4], 16  }
   0xd   :  { %4241 = vsyncadd [#allocation4], 4294967280 }
   0xe   :  { %42 = sfence }
   0xf   :  { %v3353_v0 = vld [vmem:[%s4927_s2 + $0x10] sm:$0xff]  ;;  %v3354_v1 = vld [vmem:[%s4927_s2 + $0x18] sm:$0xff]  ;;  %v4313_v2 = vld [vmem:[%s4926_s1] sm:$0xff]  ;;  %v4245_v3 = vmov 0.0|0.0   ;;  %vm4246_vm0 = vmmov 0   ;;  %v4247_v5 = vmov 0.0  }
  0x10   :  { %3959 = vmatprep.subr.bf16.mxu0 %v4245_v3  ;;  %v3960_v4 = vpack.c.bf16 %v3354_v1, %v3353_v0  ;;  %3639 = vmatprep.mubr.msk.f32.mxu0 %vm4246_vm0, %v4247_v5  ;;  %v47_v6 = vand.u32 2139095040, %v4313_v2  ;;  %v44_v8 = vand.u32 2147483647, %v4313_v2  ;;  %v4248_v17 = vmov 683565275   ;;  %s1412_s13 = sld [smem:[#allocation2]] }
  0x11   :  { %3983 = vmatprep.subr.bf16.mxu1 %v4245_v3  ;;  %3696 = vmatprep.mubr.msk.f32.mxu1 %vm4246_vm0, %v4247_v5  ;;  %v4249_v19 = vmov 2475754826   ;;  %v4250_v21 = vmov 2131351028   ;;  %v4251_v23 = vmov 2102212464   ;;  %vm136_vm13 = vweird.f32 %v4313_v2 }
  0x12   :  { %3961 = vmatpush3.bf16.msra.mxu0 %v3960_v4  ;;  %v48_v7 = vshrl.u32 %v47_v6, 23  ;;  %v51_v11 = vand.u32 8388607, %v44_v8  ;;  %v4252_v25 = vmov 920167782   ;;  %vm46_vm8 = vcmp.lt.s32.totalorder %v4313_v2, 0 }
  0x13   :  { %3962 = vmatprep.subr.bf16.mxu0 %v4245_v3  ;;  %v4253_v32 = vmov 1326507024   ;;  %vm45_vm9 = vcmp.le.f32.partialorder %v44_v8, 0.7853982  ;;  %v262_v8 = vld [vmem:[%s4927_s2] sm:$0xff]  ;;  %s3490_s23 = sld [smem:[#allocation2 + $0x2]] }
  0x14   :  { %v3345_v9 = vadd.s32 4294967169, %v48_v7  ;;  %v52_v14 = vor.u32 8388608, %v51_v11  ;;  %s4255_s24 = smov [#allocation5]  }
  0x15   :  { %s3336_s25 = sshll.u32 %s4255_s24, 4  ;;  %s3337_s25 = int_to_ptr.vmem [resolvable:$true] %s3336_s25 }
  0x16   :  { %v54_v10 = vadd.s32 1, %v3345_v9  ;;  %v92_v34 = vshll.u32 %v52_v14, 8  ;;  %p4223_p6 = scmp.lt.s32.totalorder %s3337_s25, %s3337_s25 }
  0x18   :  { %vm55_vm1 = vcmp.gt.s32.totalorder %v54_v10, 0 }
  0x19   :  { %v56_v12 = vsel %vm55_vm1, %v54_v10, 0  ;;  %vm267_vm1 = vcmask 130048  }
  0x1a   :  { %v58_v13 = vand.u32 31, %v56_v12  ;;  %v57_v15 = vshrl.u32 %v56_v12, 5 }
  0x1c   :  { %v59_v16 = vsub.s32 32, %v58_v13  ;;  %v61_v18 = vshll.u32 %v4248_v17, %v58_v13  ;;  %v64_v20 = vshll.u32 %v4249_v19, %v58_v13  ;;  %v67_v22 = vshll.u32 %v4250_v21, %v58_v13 }
  0x1d   :  { %v70_v24 = vshll.u32 %v4251_v23, %v58_v13  ;;  %v73_v26 = vshll.u32 %v4252_v25, %v58_v13  ;;  %vm76_vm2 = vcmp.lt.s32.totalorder %v57_v15, 1  ;;  %vm79_vm3 = vcmp.lt.s32.totalorder %v57_v15, 4 }
  0x1e   :  { %v60_v27 = vshrl.u32 %v4248_v17, %v59_v16  ;;  %v62_v28 = vshrl.u32 %v4249_v19, %v59_v16  ;;  %v65_v29 = vshrl.u32 %v4250_v21, %v59_v16  ;;  %v68_v30 = vshrl.u32 %v4251_v23, %v59_v16 }
  0x1f   :  { %v71_v31 = vshrl.u32 %v4252_v25, %v59_v16  ;;  %v74_v33 = vshrl.u32 %v4253_v32, %v59_v16  ;;  %vm77_vm4 = vcmp.lt.s32.totalorder %v57_v15, 2  ;;  %vm78_vm5 = vcmp.lt.s32.totalorder %v57_v15, 3 }
  0x20   :  { %v63_v35 = vor.u32 %v62_v28, %v61_v18  ;;  %v66_v36 = vor.u32 %v65_v29, %v64_v20  ;;  %v69_v37 = vor.u32 %v68_v30, %v67_v22 }
  0x21   :  { %v72_v38 = vor.u32 %v71_v31, %v70_v24  ;;  %v75_v39 = vor.u32 %v74_v33, %v73_v26 }
  0x22   :  { %v80_v40 = vsel %vm76_vm2, %v60_v27, %v63_v35  ;;  %v81_v41 = vsel %vm79_vm3, %v69_v37, 2102212464  ;;  %v84_v42 = vsel %vm76_vm2, %v63_v35, %v66_v36  ;;  %v88_v43 = vsel %vm76_vm2, %v66_v36, %v69_v37 }
  0x23   :  { %v82_v44 = vsel %vm78_vm5, %v66_v36, %v81_v41  ;;  %v85_v45 = vsel %vm79_vm3, %v72_v38, 920167782  ;;  %v89_v46 = vsel %vm79_vm3, %v75_v39, 1326507024  ;;  %v263_v39 = vld [vmem:[%s4927_s2 + $0x8] sm:$0xff] }
  0x24   :  { %v86_v47 = vsel %vm78_vm5, %v69_v37, %v85_v45  ;;  %v90_v48 = vsel %vm78_vm5, %v72_v38, %v89_v46  ;;  %v83_v49 = vsel %vm77_vm4, %v80_v40, %v82_v44 }
  0x25   :  { %v87_v50 = vsel %vm77_vm4, %v84_v42, %v86_v47  ;;  %v91_v51 = vsel %vm77_vm4, %v88_v43, %v90_v48  ;;  %v99_v56 = vmul.u32 %v92_v34, %v83_v49  ;;  %v3963_v43 = vpack.c.bf16 %v263_v39, %v262_v8  ;;  %v3357_v49 = vld [vmem:[%s4927_s2 + $0x20] sm:$0xff] }
  0x26   :  { %v4337_v52 = vmul.u32.u64.low %v92_v34, %v91_v51  ;;  %v4338_v53 = vmul.u32.u64.high %v92_v34, %v91_v51, %v4337_v52  ;;  %v4340_v54 = vmul.u32.u64.low %v92_v34, %v87_v50  ;;  %v4341_v55 = vmul.u32.u64.high %v92_v34, %v87_v50, %v4340_v54  ;;  %v3358_v50 = vld [vmem:[%s4927_s2 + $0x28] sm:$0xff] }
  0x27   :  { %v3966_v52 = vpack.c.bf16 %v3358_v50, %v3357_v49 }
  0x28   :  { %vm101_vm6 = vc.u32 %v4338_v53, %v4340_v54  ;;  %v102_v57 = vadd.s32 1, %v4341_v55  ;;  %v100_v7 = vadd.s32 %v4340_v54, %v4338_v53 }
  0x2a   :  { %v103_v58 = vsel %vm101_vm6, %v102_v57, %v4341_v55  ;;  %v3360_v55 = vld [vmem:[%s4927_s2 + $0x30] sm:$0xff] }
  0x2b   :  { %v104_v59 = vadd.s32 %v103_v58, %v99_v56  ;;  %v3361_v56 = vld [vmem:[%s4927_s2 + $0x38] sm:$0xff] }
  0x2c   :  { %v3969_v58 = vpack.c.bf16 %v3361_v56, %v3360_v55 }
  0x2d   :  { %v105_v60 = vadd.s32 536870912, %v104_v59 }
  0x2f   :  { %v106_v61 = vshrl.u32 %v105_v60, 30  ;;  %v3363_v60 = vld [vmem:[%s4927_s2 + $0x40] sm:$0xff] }
  0x31   :  { %v107_v62 = vshll.u32 %v106_v61, 30  ;;  %v130_v24 = vsub.s32 4, %v106_v61 }
  0x33   :  { %v108_v63 = vsub.s32 %v104_v59, %v107_v62  ;;  %v131_v28 = vsel %vm46_vm8, %v130_v24, %v106_v61  ;;  %v3364_v61 = vld [vmem:[%s4927_s2 + $0x48] sm:$0xff] }
  0x34   :  { %v133_v31 = vsel %vm45_vm9, 0, %v131_v28 }
  0x35   :  { %v110_v0 = vsub.s32 0, %v108_v63  ;;  %v240_v33 = vadd.s32 3, %v133_v31  ;;  %v137_v35 = vand.u32 3, %v133_v31 }
  0x37   :  { %v3346_v1 = vmin.u32 %v110_v0, %v108_v63  ;;  %v241_v34 = vand.u32 3, %v240_v33  ;;  %vm139_vm14 = vcmp.eq.s32.totalorder %v137_v35, 0  ;;  %vm142_vm15 = vcmp.eq.s32.totalorder %v137_v35, 2 }
  0x38   :  { %vm138_vm2 = vcmp.lt.s32.totalorder %v137_v35, 2 }
  0x39   :  { %v112_v4 = vclz %v3346_v1  ;;  %vm246_vm10 = vcmp.eq.s32.totalorder %v241_v34, 2  ;;  %vm243_vm11 = vcmp.eq.s32.totalorder %v241_v34, 0  ;;  %vm242_vm12 = vcmp.lt.s32.totalorder %v241_v34, 2 }
  0x3b   :  { %v3347_v6 = vadd.s32 4294967294, %v112_v4  ;;  %v3366_v4 = vld [vmem:[%s4927_s2 + $0x50] sm:$0xff] }
  0x3d   :  { %vm3348_vm7 = vcmp.lt.s32.totalorder %v3347_v6, 0 }
  0x3e   :  { %v115_v9 = vsel %vm3348_vm7, 0, %v3347_v6  ;;  %v3367_v6 = vld [vmem:[%s4927_s2 + $0x58] sm:$0xff]  ;;  %s3447_s2 = sld [smem:[#allocation2 + $0x1]] }
  0x3f   :  { %v116_v10 = vsub.s32 32, %v115_v9  ;;  %v117_v11 = vshll.u32 %v108_v63, %v115_v9  ;;  %v120_v12 = vsub.s32 4294967266, %v115_v9  ;;  %v3972_v63 = vpack.c.bf16 %v3364_v61, %v3363_v60 }
  0x40   :  { %v3975_v9 = vpack.c.bf16 %v3367_v6, %v3366_v4 }
  0x41   :  { %v118_v13 = vshrl.u32 %v100_v7, %v116_v10  ;;  %v121_v14 = vadd.s32 127, %v120_v12 }
  0x43   :  { %v119_v15 = vor.u32 %v118_v13, %v117_v11  ;;  %v122_v16 = vshll.u32 %v121_v14, 23  ;;  %v3377_v13 = vld [vmem:[%s4928_s3 + $0x20] sm:$0xff]  ;;  %v3378_v14 = vld [vmem:[%s4928_s3 + $0x28] sm:$0xff] }
  0x45   :  { %v123_v18 = vor.u32 4788187, %v122_v16  ;;  %v126_v20 = vcvt.s32.f32 %v119_v15  ;;  %v940_v15 = vld [vmem:[%s4928_s3] sm:$0xff]  ;;  %v3978_v16 = vpack.c.bf16 %v3378_v14, %v3377_v13 }
  0x47   :  { %v124_v22 = vand.u32 2147483647, %v123_v18  ;;  %v941_v18 = vld [vmem:[%s4928_s3 + $0x8] sm:$0xff] }
  0x48   :  { %v3984_v24 = vpack.c.bf16 %v941_v18, %v940_v15 }
  0x49   :  { %v127_v26 = vmul.f32 %v126_v20, %v124_v22  ;;  %v3379_v20 = vld [vmem:[%s4928_s3 + $0x30] sm:$0xff]  ;;  %v3380_v22 = vld [vmem:[%s4928_s3 + $0x38] sm:$0xff] }
  0x4a   :  { %v3981_v28 = vpack.c.bf16 %v3380_v22, %v3379_v20  ;;  %3985 = vmatpush3.bf16.msra.mxu1 %v3984_v24 }
  0x4b   :  { %v128_v27 = vxor.u32 2147483648, %v127_v26  ;;  %3986 = vmatprep.subr.bf16.mxu1 %v4245_v3 }
  0x4d   :  { %v129_v29 = vsel %vm46_vm8, %v128_v27, %v127_v26  ;;  %v942_v26 = vld [vmem:[%s4928_s3 + $0x10] sm:$0xff]  ;;  %v943_v27 = vld [vmem:[%s4928_s3 + $0x18] sm:$0xff] }
  0x4e   :  { %v132_v30 = vsel %vm45_vm9, %v4313_v2, %v129_v29  ;;  %v3987_v29 = vpack.c.bf16 %v943_v27, %v942_v26 }
  0x4f   :  { %4189 = vcosq.f32 %v132_v30 }
  0x50   :  { %4191 = vsinq.f32 %v132_v30  ;;  %3988 = vmatpush3.bf16.msra.mxu1 %v3987_v29 }
  0x51   :  { %3989 = vmatprep.subr.bf16.mxu1 %v4245_v3 }
  0x59   :  { %v4190_v36 = vpop.eup %4189 }
  0x5a   :  { %v4192_v37 = vpop.eup %4191  ;;  %v143_v38 = vxor.u32 2147483648, %v4190_v36 }
  0x5b   :  { %v140_v40 = vxor.u32 2147483648, %v4192_v37 }
  0x5c   :  { %v248_v41 = vsel %vm246_vm10, %v143_v38, %v4192_v37  ;;  %v144_v47 = vsel %vm142_vm15, %v143_v38, %v4192_v37 }
  0x5d   :  { %v245_v42 = vsel %vm243_vm11, %v4190_v36, %v140_v40  ;;  %v141_v46 = vsel %vm139_vm14, %v4190_v36, %v140_v40 }
  0x5e   :  { %v249_v44 = vsel %vm242_vm12, %v245_v42, %v248_v41  ;;  %v145_v48 = vsel %vm138_vm2, %v141_v46, %v144_v47  ;;  %vm949_vm12 = vcmask 261120  }
  0x5f   :  { %v250_v45 = vsel %vm136_vm13, nan, %v249_v44  ;;  %v146_v51 = vsel %vm136_vm13, nan, %v145_v48 }
  0x60   :  { %3640 = vmatmul.mubr.msk.f32.vlgmr.msra.gmra.mrb[0].mxu0 %vm267_vm1, %v250_v45  ;;  %v252_v53 = vmul.f32 %v250_v45, %v250_v45  ;;  %v251_v54 = vmul.f32 %v146_v51, %v146_v51  ;;  %v254_v59 = vmul.f32 %v250_v45, %v146_v51 }
  0x61   :  { %3964 = vmatpush3.bf16.msra.mxu0 %v3963_v43  ;;  %3646 = vmatprep.mubr.msk.f32.mxu0 %vm4246_vm0, %v4247_v5 }
  0x62   :  { %3965 = vmatprep.subr.bf16.mxu0 %v4245_v3  ;;  %v253_v57 = vsub.f32 %v251_v54, %v252_v53  ;;  %v255_v62 = vadd.f32 %v254_v59, %v254_v59 }
  0x64   :  { %v256_v0 = vmul.f32 %v253_v57, %v146_v51  ;;  %v257_v1 = vmul.f32 %v255_v62, %v250_v45  ;;  %v259_v10 = vmul.f32 %v255_v62, %v146_v51  ;;  %v260_v11 = vmul.f32 %v253_v57, %v250_v45 }
  0x66   :  { %v258_v7 = vsub.f32 %v256_v0, %v257_v1  ;;  %v261_v12 = vadd.f32 %v260_v11, %v259_v10 }
  0x68   :  { %3647 = vmatmul.mubr.msk.f32.vlgmr.msra.gmra.mrb[0].mxu0 %vm267_vm1, %v146_v51 }
  0x69   :  { %3967 = vmatpush3.bf16.msra.mxu0 %v3966_v52  ;;  %3653 = vmatprep.mubr.msk.f32.mxu0 %vm4246_vm0, %v4247_v5 }
  0x6a   :  { %3968 = vmatprep.subr.bf16.mxu0 %v4245_v3 }
  0x70   :  { %3654 = vmatmul.mubr.msk.f32.vlgmr.msra.gmra.mrb[0].mxu0 %vm267_vm1, %v253_v57 }
  0x71   :  { %3970 = vmatpush3.bf16.msra.mxu0 %v3969_v58  ;;  %3660 = vmatprep.mubr.msk.f32.mxu0 %vm4246_vm0, %v4247_v5 }
  0x72   :  { %3971 = vmatprep.subr.bf16.mxu0 %v4245_v3 }
  0x78   :  { %3661 = vmatmul.mubr.msk.f32.vlgmr.msra.gmra.mrb[0].mxu0 %vm267_vm1, %v255_v62 }
  0x79   :  { %3973 = vmatpush3.bf16.msra.mxu0 %v3972_v63  ;;  %3667 = vmatprep.mubr.msk.f32.mxu0 %vm4246_vm0, %v4247_v5 }
  0x7a   :  { %3974 = vmatprep.subr.bf16.mxu0 %v4245_v3 }
  0x80   :  { %3668 = vmatmul.mubr.msk.f32.vlgmr.msra.gmra.mrb[0].mxu0 %vm267_vm1, %v258_v7 }
  0x81   :  { %3976 = vmatpush3.bf16.msra.mxu0 %v3975_v9  ;;  %3674 = vmatprep.mubr.msk.f32.mxu0 %vm4246_vm0, %v4247_v5 }
  0x82   :  { %3977 = vmatprep.subr.bf16.mxu0 %v4245_v3 }
  0x88   :  { %3675 = vmatmul.mubr.msk.f32.vlgmr.msra.gmra.mrb[0].mxu0 %vm267_vm1, %v261_v12 }
  0x89   :  { %3685 = vmatprep.mubr.msk.f32.mxu0 %vm4246_vm0, %v4247_v5  ;;  %3979 = vmatpush3.bf16.msra.mxu0 %v3978_v16 }
  0x8a   :  { %3980 = vmatprep.subr.bf16.mxu0 %v4245_v3 }
  0x8d   :  { %3982 = vmatpush3.bf16.msra.mxu0 %v3981_v28  ;;  %v3403_v28 = vadd.f32 1.0, %v4313_v2 }
  0x8e   :  { %4013 = vmatprep.subr.bf16.mxu0 %v4245_v3 }
 0x15b   :  { %v4437_v30 = vpop.f32.mrb[0].mxu0 }
 0x15c   :  { %v725_v31 = vand.u32 2139095040, %v4437_v30  ;;  %v3676_v33 = vpop.f32.mrb[1].mxu0  ;;  %v722_v37 = vand.u32 2147483647, %v4437_v30  ;;  %vm724_vm10 = vcmp.lt.s32.totalorder %v4437_v30, 0 }
 0x15e   :  { %v726_v34 = vshrl.u32 %v725_v31, 23  ;;  %v729_v39 = vand.u32 8388607, %v722_v37  ;;  %vm723_vm11 = vcmp.le.f32.partialorder %v722_v37, 0.7853982  ;;  %v3405_v37 = vld [vmem:[%s4929_s4 + $0x18] sm:$0xff] }
 0x160   :  { %v3369_v35 = vadd.s32 4294967169, %v726_v34  ;;  %v730_v52 = vor.u32 8388608, %v729_v39 }
 0x162   :  { %v732_v36 = vadd.s32 1, %v3369_v35 }
 0x164   :  { %vm733_vm3 = vcmp.gt.s32.totalorder %v732_v36, 0 }
 0x165   :  { %v734_v38 = vsel %vm733_vm3, %v732_v36, 0 }
 0x166   :  { %v736_v8 = vand.u32 31, %v734_v38  ;;  %v735_v41 = vshrl.u32 %v734_v38, 5  ;;  %v1416_v38 = vmul.f32 2.5, %v3403_v28  ;;  %v3389_v28 = vld [vmem:[%s4928_s3 + $0x68] sm:$0xff] }
 0x168   :  { %v737_v40 = vsub.s32 32, %v736_v8  ;;  %v739_v42 = vshll.u32 %v4248_v17, %v736_v8  ;;  %v742_v43 = vshll.u32 %v4249_v19, %v736_v8  ;;  %v745_v46 = vshll.u32 %v4250_v21, %v736_v8 }
 0x169   :  { %v748_v48 = vshll.u32 %v4251_v23, %v736_v8  ;;  %v751_v50 = vshll.u32 %v4252_v25, %v736_v8  ;;  %vm754_vm4 = vcmp.lt.s32.totalorder %v735_v41, 1  ;;  %vm757_vm5 = vcmp.lt.s32.totalorder %v735_v41, 4 }
 0x16a   :  { %v740_v44 = vshrl.u32 %v4249_v19, %v737_v40  ;;  %v743_v45 = vshrl.u32 %v4250_v21, %v737_v40  ;;  %v746_v47 = vshrl.u32 %v4251_v23, %v737_v40  ;;  %v749_v49 = vshrl.u32 %v4252_v25, %v737_v40 }
 0x16b   :  { %v752_v51 = vshrl.u32 %v4253_v32, %v737_v40  ;;  %v738_v59 = vshrl.u32 %v4248_v17, %v737_v40  ;;  %vm756_vm6 = vcmp.lt.s32.totalorder %v735_v41, 3  ;;  %vm755_vm7 = vcmp.lt.s32.totalorder %v735_v41, 2 }
 0x16c   :  { %v741_v53 = vor.u32 %v740_v44, %v739_v42  ;;  %v744_v54 = vor.u32 %v743_v45, %v742_v43  ;;  %v747_v55 = vor.u32 %v746_v47, %v745_v46  ;;  %v750_v56 = vor.u32 %v749_v49, %v748_v48 }
 0x16d   :  { %v753_v19 = vor.u32 %v752_v51, %v751_v50  ;;  %v770_v32 = vshll.u32 %v730_v52, 8  ;;  %v1421_v41 = vmul.f32 2.0, %v1416_v38  ;;  %v1417_v44 = vmul.f32 %v1416_v38, %v1416_v38  ;;  %v3390_v38 = vld [vmem:[%s4928_s3 + $0x70] sm:$0xff] }
 0x16e   :  { %v759_v57 = vsel %vm757_vm5, %v747_v55, 2102212464  ;;  %v762_v21 = vsel %vm754_vm4, %v741_v53, %v744_v54  ;;  %v766_v58 = vsel %vm754_vm4, %v744_v54, %v747_v55  ;;  %v763_v23 = vsel %vm757_vm5, %v750_v56, 920167782 }
 0x16f   :  { %v767_v60 = vsel %vm757_vm5, %v753_v19, 1326507024  ;;  %v764_v25 = vsel %vm756_vm6, %v747_v55, %v763_v23  ;;  %v758_v62 = vsel %vm754_vm4, %v738_v59, %v741_v53  ;;  %v760_v63 = vsel %vm756_vm6, %v744_v54, %v759_v57 }
 0x170   :  { %v768_v61 = vsel %vm756_vm6, %v750_v56, %v767_v60  ;;  %v765_v0 = vsel %vm755_vm7, %v762_v21, %v764_v25  ;;  %v761_v10 = vsel %vm755_vm7, %v758_v62, %v760_v63  ;;  %v1422_v47 = vmul.f32 1.442695, %v1421_v41  ;;  %v3404_v56 = vld [vmem:[%s4929_s4 + $0x10] sm:$0xff]  ;;  %v3383_v21 = vld [vmem:[%s4928_s3 + $0x40] sm:$0xff] }
 0x171   :  { %v769_v1 = vsel %vm755_vm7, %v766_v58, %v768_v61  ;;  %v4457_v7 = vmul.u32.u64.low %v770_v32, %v765_v0  ;;  %v4458_v9 = vmul.u32.u64.high %v770_v32, %v765_v0, %v4457_v7  ;;  %v777_v11 = vmul.u32 %v770_v32, %v761_v10  ;;  %v3384_v58 = vld [vmem:[%s4928_s3 + $0x48] sm:$0xff] }
 0x172   :  { %v4454_v4 = vmul.u32.u64.low %v770_v32, %v769_v1  ;;  %v4455_v6 = vmul.u32.u64.high %v770_v32, %v769_v1, %v4454_v4  ;;  %v1418_v49 = vsub.f32 0.0, %v1417_v44  ;;  %4193 = vpow2.f32 %v1422_v47  ;;  %v3394_v47 = vld [vmem:[%s4928_s3 + $0x88] sm:$0xff] }
 0x173   :  { %v780_v17 = vadd.s32 1, %v4458_v9  ;;  %v4014_v61 = vpack.c.bf16 %v3405_v37, %v3404_v56  ;;  %v3990_v32 = vpack.c.bf16 %v3384_v58, %v3383_v21  ;;  %vm814_vm5 = vweird.f32 %v4437_v30  ;;  %v3396_v56 = vld [vmem:[%s4928_s3 + $0x98] sm:$0xff] }
 0x174   :  { %vm779_vm8 = vc.u32 %v4455_v6, %v4457_v7  ;;  %v778_v29 = vadd.s32 %v4457_v7, %v4455_v6  ;;  %v1419_v53 = vmul.f32 1.442695, %v1418_v49 }
 0x175   :  { %v781_v12 = vsel %vm779_vm8, %v780_v17, %v4458_v9  ;;  %v1434_v9 = vld [vmem:[%s4929_s4] sm:$0xff] }
 0x176   :  { %v782_v13 = vadd.s32 %v781_v12, %v777_v11  ;;  %v1435_v11 = vld [vmem:[%s4929_s4 + $0x8] sm:$0xff]  ;;  %v3385_v12 = vld [vmem:[%s4928_s3 + $0x50] sm:$0xff] }
 0x178   :  { %v783_v14 = vadd.s32 536870912, %v782_v13 }
 0x17a   :  { %v784_v15 = vshrl.u32 %v783_v14, 30 }
 0x17c   :  { %v785_v16 = vshll.u32 %v784_v15, 30  ;;  %v808_v46 = vsub.s32 4, %v784_v15  ;;  %v4481_v59 = vpop.eup %4193 }
 0x17d   :  { %v1424_v63 = vmul.f32 0.36787945, %v4481_v59  ;;  %v1430_v49 = vmul.f32 0.000911882, %v4481_v59 }
 0x17e   :  { %v786_v18 = vsub.s32 %v782_v13, %v785_v16  ;;  %v809_v51 = vsel %vm724_vm10, %v808_v46, %v784_v15  ;;  %v3386_v13 = vld [vmem:[%s4928_s3 + $0x58] sm:$0xff]  ;;  %v4017_v16 = vpack.c.bf16 %v1435_v11, %v1434_v9  ;;  %v3393_v46 = vld [vmem:[%s4928_s3 + $0x80] sm:$0xff]  ;;  %v2392_v9 = vld [vmem:[%s4931_s6 + $0x8] sm:$0xff] }
 0x17f   :  { %v811_v54 = vsel %vm723_vm11, 0, %v809_v51  ;;  %v4002_v51 = vpack.c.bf16 %v3394_v47, %v3393_v46  ;;  %v3452_v11 = vld [vmem:[%s4931_s6 + $0x20] sm:$0xff] }
 0x180   :  { %v788_v20 = vsub.s32 0, %v786_v18  ;;  %v918_v55 = vadd.s32 3, %v811_v54  ;;  %v815_v19 = vand.u32 3, %v811_v54  ;;  %v3418_v54 = vld [vmem:[%s4929_s4 + $0x58] sm:$0xff] }
 0x182   :  { %v3370_v22 = vmin.u32 %v788_v20, %v786_v18  ;;  %v919_v57 = vand.u32 3, %v918_v55  ;;  %vm820_vm14 = vcmp.eq.s32.totalorder %v815_v19, 2  ;;  %vm817_vm2 = vcmp.eq.s32.totalorder %v815_v19, 0  ;;  %v3408_v20 = vld [vmem:[%s4929_s4 + $0x20] sm:$0xff]  ;;  %v3395_v55 = vld [vmem:[%s4928_s3 + $0x90] sm:$0xff] }
 0x183   :  { %vm816_vm4 = vcmp.lt.s32.totalorder %v815_v19, 2  ;;  %v4005_v21 = vpack.c.bf16 %v3396_v56, %v3395_v55 }
 0x184   :  { %v790_v24 = vclz %v3370_v22  ;;  %vm924_vm13 = vcmp.eq.s32.totalorder %v919_v57, 2  ;;  %vm921_vm15 = vcmp.eq.s32.totalorder %v919_v57, 0  ;;  %vm920_vm3 = vcmp.lt.s32.totalorder %v919_v57, 2 }
 0x185   :  { %v1432_v57 = vmul.f32 0.0001234098, %v4481_v59 }
 0x186   :  { %v3371_v26 = vadd.s32 4294967294, %v790_v24 }
 0x188   :  { %vm3372_vm9 = vcmp.lt.s32.totalorder %v3371_v26, 0 }
 0x189   :  { %v793_v27 = vsel %vm3372_vm9, 0, %v3371_v26  ;;  %v3409_v26 = vld [vmem:[%s4929_s4 + $0x28] sm:$0xff] }
 0x18a   :  { %v794_v31 = vsub.s32 32, %v793_v27  ;;  %v798_v33 = vsub.s32 4294967266, %v793_v27  ;;  %v795_v34 = vshll.u32 %v786_v18, %v793_v27  ;;  %v3993_v18 = vpack.c.bf16 %v3386_v13, %v3385_v12  ;;  %v3388_v27 = vld [vmem:[%s4928_s3 + $0x60] sm:$0xff]  ;;  %v3453_v12 = vld [vmem:[%s4931_s6 + $0x28] sm:$0xff] }
 0x18b   :  { %v4074_v13 = vpack.c.bf16 %v3453_v12, %v3452_v11  ;;  %v1914_v11 = vld [vmem:[%s4930_s5 + $0x10] sm:$0xff]  ;;  %v1915_v12 = vld [vmem:[%s4930_s5 + $0x18] sm:$0xff] }
 0x18c   :  { %v796_v35 = vshrl.u32 %v778_v29, %v794_v31  ;;  %v799_v36 = vadd.s32 127, %v798_v33  ;;  %v1426_v29 = vmul.f32 0.049787067, %v4481_v59  ;;  %v4020_v31 = vpack.c.bf16 %v3409_v26, %v3408_v20  ;;  %v3456_v20 = vld [vmem:[%s4931_s6 + $0x38] sm:$0xff] }
 0x18d   :  { %v3996_v33 = vpack.c.bf16 %v3389_v28, %v3388_v27 }
 0x18e   :  { %v797_v8 = vor.u32 %v796_v35, %v795_v34  ;;  %v800_v39 = vshll.u32 %v799_v36, 23  ;;  %v3411_v34 = vld [vmem:[%s4929_s4 + $0x30] sm:$0xff]  ;;  %v3412_v36 = vld [vmem:[%s4929_s4 + $0x38] sm:$0xff] }
 0x18f   :  { %v4023_v41 = vpack.c.bf16 %v3412_v36, %v3411_v34  ;;  %v3462_v36 = vld [vmem:[%s4931_s6 + $0x58] sm:$0xff] }
 0x190   :  { %v801_v40 = vor.u32 4788187, %v800_v39  ;;  %v804_v43 = vcvt.s32.f32 %v797_v8  ;;  %v3391_v8 = vld [vmem:[%s4928_s3 + $0x78] sm:$0xff] }
 0x192   :  { %v802_v42 = vand.u32 2147483647, %v801_v40  ;;  %v1428_v40 = vmul.f32 0.006737947, %v4481_v59  ;;  %v3399_v59 = vld [vmem:[%s4928_s3 + $0xa8] sm:$0xff] }
 0x194   :  { %v805_v45 = vmul.f32 %v804_v43, %v802_v42  ;;  %v3999_v42 = vpack.c.bf16 %v3391_v8, %v3390_v38  ;;  %v3414_v43 = vld [vmem:[%s4929_s4 + $0x40] sm:$0xff] }
 0x196   :  { %v806_v48 = vxor.u32 2147483648, %v805_v45 }
 0x198   :  { %v807_v50 = vsel %vm724_vm10, %v806_v48, %v805_v45  ;;  %v3415_v45 = vld [vmem:[%s4929_s4 + $0x48] sm:$0xff] }
 0x199   :  { %v810_v52 = vsel %vm723_vm11, %v4437_v30, %v807_v50  ;;  %v4026_v50 = vpack.c.bf16 %v3415_v45, %v3414_v43 }
 0x19a   :  { %4195 = vcosq.f32 %v810_v52 }
 0x19b   :  { %4197 = vsinq.f32 %v810_v52  ;;  %v3417_v52 = vld [vmem:[%s4929_s4 + $0x50] sm:$0xff] }
 0x19c   :  { %4199 = vpow2.f32 %v1419_v53  ;;  %v4029_v37 = vpack.c.bf16 %v3418_v54, %v3417_v52  ;;  %v3465_v52 = vld [vmem:[%s4932_s7 + $0x28] sm:$0xff] }
 0x1a4   :  { %v4196_v23 = vpop.eup %4195 }
 0x1a5   :  { %v4198_v60 = vpop.eup %4197  ;;  %v821_v25 = vxor.u32 2147483648, %v4196_v23 }
 0x1a6   :  { %v818_v62 = vxor.u32 2147483648, %v4198_v60  ;;  %v4200_v4 = vpop.eup %4199 }
 0x1a7   :  { %v926_v0 = vsel %vm924_vm13, %v821_v25, %v4198_v60  ;;  %v822_v1 = vsel %vm820_vm14, %v821_v25, %v4198_v60  ;;  %v1425_v30 = vmul.f32 %v4200_v4, %v1424_v63  ;;  %v3398_v60 = vld [vmem:[%s4928_s3 + $0xa0] sm:$0xff]  ;;  %v3401_v63 = vld [vmem:[%s4928_s3 + $0xb8] sm:$0xff] }
 0x1a8   :  { %v923_v6 = vsel %vm921_vm15, %v4196_v23, %v818_v62  ;;  %v819_v7 = vsel %vm817_vm2, %v4196_v23, %v818_v62  ;;  %v3400_v62 = vld [vmem:[%s4928_s3 + $0xb0] sm:$0xff] }
 0x1a9   :  { %v927_v10 = vsel %vm920_vm3, %v923_v6, %v926_v0  ;;  %v823_v17 = vsel %vm816_vm4, %v819_v7, %v822_v1  ;;  %v1427_v39 = vmul.f32 %v1426_v29, %v1425_v30  ;;  %v4011_v0 = vpack.c.bf16 %v3401_v63, %v3400_v62  ;;  %v2391_v7 = vld [vmem:[%s4931_s6] sm:$0xff] }
 0x1aa   :  { %v4497_v14 = vsel %vm814_vm5, nan, %v927_v10  ;;  %v4499_v15 = vsel %vm814_vm5, nan, %v823_v17  ;;  %v4071_v10 = vpack.c.bf16 %v2392_v9, %v2391_v7  ;;  %v4254_v17 = vmov 1.0   ;;  %v3458_v29 = vld [vmem:[%s4931_s6 + $0x40] sm:$0xff] }
 0x1ab   :  { %3686 = vmatmul.mubr.msk.f32.vlgmr.msra.gmra.mrb[2].mxu0 %vm949_vm12, %v4497_v14  ;;  %3697 = vmatmul.mubr.msk.f32.vlgmr.msra.gmra.mrb[0].mxu1 %vm949_vm12, %v4499_v15  ;;  %v930_v22 = vmul.f32 %v4497_v14, %v4497_v14  ;;  %v929_v24 = vmul.f32 %v4499_v15, %v4499_v15  ;;  %v932_v44 = vmul.f32 %v4497_v14, %v4499_v15 }
 0x1ac   :  { %4015 = vmatpush3.bf16.msra.mxu0 %v4014_v61  ;;  %3991 = vmatpush3.bf16.msra.mxu1 %v3990_v32  ;;  %v1429_v48 = vmul.f32 %v1428_v40, %v1427_v39  ;;  %v4008_v61 = vpack.c.bf16 %v3399_v59, %v3398_v60 }
 0x1ad   :  { %3747 = vmatprep.mubr.msk.f32.mxu0 %vm4246_vm0, %v4247_v5  ;;  %4016 = vmatprep.subr.bf16.mxu0 %v4245_v3  ;;  %v4532_v35 = vsub.f32 %v929_v24, %v930_v22  ;;  %v933_v53 = vadd.f32 %v932_v44, %v932_v44  ;;  %v3423_v22 = vld [vmem:[%s4930_s5 + $0x30] sm:$0xff]  ;;  %v3424_v24 = vld [vmem:[%s4930_s5 + $0x38] sm:$0xff] }
 0x1ae   :  { %3992 = vmatprep.subr.bf16.mxu1 %v4245_v3  ;;  %3707 = vmatprep.mubr.msk.f32.mxu1 %vm4246_vm0, %v4247_v5  ;;  %v1431_v19 = vmul.f32 %v1430_v49, %v1429_v48  ;;  %v4035_v27 = vpack.c.bf16 %v3424_v24, %v3423_v22  ;;  %v3432_v22 = vld [vmem:[%s4930_s5 + $0x60] sm:$0xff]  ;;  %v3433_v24 = vld [vmem:[%s4930_s5 + $0x68] sm:$0xff] }
 0x1af   :  { %3748 = vmatmul.mubr.msk.f32.vlgmr.msra.gmra.mrb[4].mxu0 %vm267_vm1, %v1425_v30  ;;  %v934_v58 = vmul.f32 %v4532_v35, %v4499_v15  ;;  %v935_v23 = vmul.f32 %v933_v53, %v4497_v14  ;;  %v937_v1 = vmul.f32 %v933_v53, %v4499_v15  ;;  %v3421_v15 = vld [vmem:[%s4930_s5 + $0x20] sm:$0xff]  ;;  %v3422_v30 = vld [vmem:[%s4930_s5 + $0x28] sm:$0xff] }
 0x1b0   :  { %4018 = vmatpush3.bf16.msra.mxu0 %v4017_v16  ;;  %3994 = vmatpush3.bf16.msra.mxu1 %v3993_v18  ;;  %v1433_v25 = vmul.f32 %v1432_v57, %v1431_v19  ;;  %v3455_v16 = vld [vmem:[%s4931_s6 + $0x30] sm:$0xff]  ;;  %v4032_v18 = vpack.c.bf16 %v3422_v30, %v3421_v15  ;;  %v3428_v15 = vld [vmem:[%s4930_s5 + $0x48] sm:$0xff] }
 0x1b1   :  { %3754 = vmatprep.mubr.msk.f32.mxu0 %vm4246_vm0, %v4247_v5  ;;  %4019 = vmatprep.subr.bf16.mxu0 %v4245_v3  ;;  %v936_v32 = vsub.f32 %v934_v58, %v935_v23  ;;  %v4077_v26 = vpack.c.bf16 %v3456_v20, %v3455_v16  ;;  %v3429_v16 = vld [vmem:[%s4930_s5 + $0x50] sm:$0xff] }
 0x1b2   :  { %3995 = vmatprep.subr.bf16.mxu1 %v4245_v3 }
 0x1b3   :  { %3708 = vmatmul.mubr.msk.f32.vlgmr.msra.gmra.mrb[0].mxu1 %vm949_vm12, %v4532_v35  ;;  %3755 = vmatmul.mubr.msk.f32.vlgmr.msra.gmra.mrb[6].mxu0 %vm267_vm1, %v4200_v4  ;;  %v938_v4 = vmul.f32 %v4532_v35, %v4497_v14  ;;  %v2387_v14 = vmul.f32 %v4313_v2, %v4313_v2  ;;  %v3461_v35 = vld [vmem:[%s4931_s6 + $0x50] sm:$0xff] }
 0x1b4   :  { %4021 = vmatpush3.bf16.msra.mxu0 %v4020_v31  ;;  %3997 = vmatpush3.bf16.msra.mxu1 %v3996_v33  ;;  %v3459_v31 = vld [vmem:[%s4931_s6 + $0x48] sm:$0xff]  ;;  %v4083_v38 = vpack.c.bf16 %v3462_v36, %v3461_v35 }
 0x1b5   :  { %3761 = vmatprep.mubr.msk.f32.mxu0 %vm4246_vm0, %v4247_v5  ;;  %4022 = vmatprep.subr.bf16.mxu0 %v4245_v3  ;;  %v939_v6 = vadd.f32 %v938_v4, %v937_v1  ;;  %v2388_v28 = vmul.f32 %v2387_v14, %v4313_v2  ;;  %v4080_v33 = vpack.c.bf16 %v3459_v31, %v3458_v29  ;;  %v1913_v1 = vld [vmem:[%s4930_s5 + $0x8] sm:$0xff]  ;;  %v3434_v29 = vld [vmem:[%s4930_s5 + $0x70] sm:$0xff]  ;;  %v3435_v31 = vld [vmem:[%s4930_s5 + $0x78] sm:$0xff] }
 0x1b6   :  { %3998 = vmatprep.subr.bf16.mxu1 %v4245_v3  ;;  %3718 = vmatprep.mubr.msk.f32.mxu1 %vm4246_vm0, %v4247_v5  ;;  %v3438_v35 = vld [vmem:[%s4930_s5 + $0x88] sm:$0xff] }
 0x1b7   :  { %3762 = vmatmul.mubr.msk.f32.vlgmr.msra.gmra.mrb[8].mxu0 %vm267_vm1, %v1427_v39  ;;  %v2389_v34 = vmul.f32 %v2388_v28, %v4313_v2 }
 0x1b8   :  { %4024 = vmatpush3.bf16.msra.mxu0 %v4023_v41  ;;  %4000 = vmatpush3.bf16.msra.mxu1 %v3999_v42 }
 0x1b9   :  { %3768 = vmatprep.mubr.msk.f32.mxu0 %vm4246_vm0, %v4247_v5  ;;  %4025 = vmatprep.subr.bf16.mxu0 %v4245_v3  ;;  %v2390_v8 = vmul.f32 %v2389_v34, %v4313_v2 }
 0x1ba   :  { %4001 = vmatprep.subr.bf16.mxu1 %v4245_v3 }
 0x1bb   :  { %3719 = vmatmul.mubr.msk.f32.vlgmr.msra.gmra.mrb[0].mxu1 %vm949_vm12, %v933_v53  ;;  %3769 = vmatmul.mubr.msk.f32.vlgmr.msra.gmra.mrb[10].mxu0 %vm267_vm1, %v1429_v48 }
 0x1bc   :  { %4027 = vmatpush3.bf16.msra.mxu0 %v4026_v50  ;;  %4003 = vmatpush3.bf16.msra.mxu1 %v4002_v51  ;;  %v3464_v51 = vld [vmem:[%s4932_s7 + $0x20] sm:$0xff] }
 0x1bd   :  { %3775 = vmatprep.mubr.msk.f32.mxu0 %vm4246_vm0, %v4247_v5  ;;  %4028 = vmatprep.subr.bf16.mxu0 %v4245_v3  ;;  %v4086_v53 = vpack.c.bf16 %v3465_v52, %v3464_v51 }
 0x1be   :  { %4004 = vmatprep.subr.bf16.mxu1 %v4245_v3  ;;  %3729 = vmatprep.mubr.msk.f32.mxu1 %vm4246_vm0, %v4247_v5 }
 0x1bf   :  { %3776 = vmatmul.mubr.msk.f32.vlgmr.msra.gmra.mrb[12].mxu0 %vm267_vm1, %v1431_v19 }
 0x1c0   :  { %4030 = vmatpush3.bf16.msra.mxu0 %v4029_v37  ;;  %4006 = vmatpush3.bf16.msra.mxu1 %v4005_v21 }
 0x1c1   :  { %3782 = vmatprep.mubr.msk.f32.mxu0 %vm4246_vm0, %v4247_v5  ;;  %4007 = vmatprep.subr.bf16.mxu1 %v4245_v3 }
 0x1c2   :  { %4031 = vmatprep.subr.bf16.mxu0 %v4245_v3 }
 0x1c3   :  { %3730 = vmatmul.mubr.msk.f32.vlgmr.msra.gmra.mrb[0].mxu1 %vm949_vm12, %v936_v32  ;;  %3783 = vmatmul.mubr.msk.f32.vlgmr.msra.gmra.mrb[14].mxu0 %vm267_vm1, %v1433_v25 }
 0x1c4   :  { %4009 = vmatpush3.bf16.msra.mxu1 %v4008_v61  ;;  %3740 = vmatprep.mubr.msk.f32.mxu1 %vm4246_vm0, %v4247_v5 }
 0x1c5   :  { %4010 = vmatprep.subr.bf16.mxu1 %v4245_v3  ;;  %3793 = vmatprep.mubr.msk.f32.mxu0 %vm4246_vm0, %v4247_v5 }
 0x1c6   :  { %4033 = vmatpush3.bf16.msra.mxu0 %v4032_v18  ;;  %v3430_v18 = vld [vmem:[%s4930_s5 + $0x58] sm:$0xff] }
 0x1c7   :  { %4034 = vmatprep.subr.bf16.mxu0 %v4245_v3  ;;  %v4047_v20 = vpack.c.bf16 %v3430_v18, %v3429_v16  ;;  %v3476_v16 = vld [vmem:[%s4932_s7 + $0x68] sm:$0xff] }
 0x1c8   :  { %4012 = vmatpush3.bf16.msra.mxu1 %v4011_v0  ;;  %v1912_v0 = vld [vmem:[%s4930_s5] sm:$0xff] }
 0x1c9   :  { %4070 = vmatprep.subr.bf16.mxu1 %v4245_v3  ;;  %v4038_v9 = vpack.c.bf16 %v1913_v1, %v1912_v0 }
 0x1ca   :  { %4036 = vmatpush3.bf16.msra.mxu0 %v4035_v27  ;;  %v4050_v27 = vpack.c.bf16 %v3433_v24, %v3432_v22  ;;  %v3478_v22 = vld [vmem:[%s4932_s7 + $0x78] sm:$0xff] }
 0x1cb   :  { %3741 = vmatmul.mubr.msk.f32.vlgmr.msra.gmra.mrb[0].mxu1 %vm949_vm12, %v939_v6  ;;  %4037 = vmatprep.subr.bf16.mxu0 %v4245_v3 }
 0x1cc   :  { %3862 = vmatprep.mubr.msk.f32.mxu1 %vm4246_vm0, %v4247_v5  ;;  %4072 = vmatpush3.bf16.msra.mxu1 %v4071_v10 }
 0x1cd   :  { %4073 = vmatprep.subr.bf16.mxu1 %v4245_v3 }
 0x1cf   :  { %3863 = vmatmul.mubr.msk.f32.vlgmr.msra.gmra.mrb[2].mxu1 %vm267_vm1, %v4254_v17 }
 0x1d0   :  { %3869 = vmatprep.mubr.msk.f32.mxu1 %vm4246_vm0, %v4247_v5  ;;  %4075 = vmatpush3.bf16.msra.mxu1 %v4074_v13  ;;  %v4041_v13 = vpack.c.bf16 %v1915_v12, %v1914_v11  ;;  %v3471_v11 = vld [vmem:[%s4932_s7 + $0x48] sm:$0xff] }
 0x1d1   :  { %4076 = vmatprep.subr.bf16.mxu1 %v4245_v3 }
 0x1d7   :  { %3870 = vmatmul.mubr.msk.f32.vlgmr.msra.gmra.mrb[2].mxu1 %vm267_vm1, %v2387_v14  ;;  %v3427_v14 = vld [vmem:[%s4930_s5 + $0x40] sm:$0xff] }
 0x1d8   :  { %3876 = vmatprep.mubr.msk.f32.mxu1 %vm4246_vm0, %v4247_v5  ;;  %4078 = vmatpush3.bf16.msra.mxu1 %v4077_v26  ;;  %v4044_v30 = vpack.c.bf16 %v3428_v15, %v3427_v14  ;;  %v3473_v14 = vld [vmem:[%s4932_s7 + $0x58] sm:$0xff] }
 0x1d9   :  { %4079 = vmatprep.subr.bf16.mxu1 %v4245_v3 }
 0x1df   :  { %3877 = vmatmul.mubr.msk.f32.vlgmr.msra.gmra.mrb[2].mxu1 %vm267_vm1, %v2388_v28 }
 0x1e0   :  { %3883 = vmatprep.mubr.msk.f32.mxu1 %vm4246_vm0, %v4247_v5  ;;  %4081 = vmatpush3.bf16.msra.mxu1 %v4080_v33  ;;  %v4053_v33 = vpack.c.bf16 %v3435_v31, %v3434_v29  ;;  %v3482_v31 = vld [vmem:[%s4932_s7 + $0x90] sm:$0xff] }
 0x1e1   :  { %4082 = vmatprep.subr.bf16.mxu1 %v4245_v3 }
 0x1e7   :  { %3884 = vmatmul.mubr.msk.f32.vlgmr.msra.gmra.mrb[2].mxu1 %vm267_vm1, %v2389_v34  ;;  %v3437_v34 = vld [vmem:[%s4930_s5 + $0x80] sm:$0xff] }
 0x1e8   :  { %3890 = vmatprep.mubr.msk.f32.mxu1 %vm4246_vm0, %v4247_v5  ;;  %4084 = vmatpush3.bf16.msra.mxu1 %v4083_v38  ;;  %v4056_v38 = vpack.c.bf16 %v3438_v35, %v3437_v34  ;;  %v3485_v35 = vld [vmem:[%s4932_s7 + $0xa0] sm:$0xff] }
 0x1e9   :  { %4085 = vmatprep.subr.bf16.mxu1 %v4245_v3 }
 0x1ef   :  { %3891 = vmatmul.mubr.msk.f32.vlgmr.msra.gmra.mrb[2].mxu1 %vm267_vm1, %v2390_v8 }
 0x1f0   :  { %3901 = vmatprep.mubr.msk.f32.mxu1 %vm4246_vm0, %v4247_v5  ;;  %4087 = vmatpush3.bf16.msra.mxu1 %v4086_v53 }
 0x1f1   :  { %4088 = vmatprep.subr.bf16.mxu1 %v4245_v3 }
 0x27e   :  { %v1019_v39 = vpop.f32.mrb[2].mxu0 }
 0x27f   :  { %v3687_v40 = vpop.f32.mrb[3].mxu0 }
 0x280   :  { %v3440_v40 = vld [vmem:[%s4930_s5 + $0x98] sm:$0xff] }
 0x282   :  { %v1508_v41 = vpop.f32.mrb[4].mxu0 }
 0x283   :  { %v3749_v42 = vpop.f32.mrb[5].mxu0 }
 0x284   :  { %v3442_v42 = vld [vmem:[%s4930_s5 + $0xa0] sm:$0xff] }
 0x286   :  { %v1581_v43 = vpop.f32.mrb[6].mxu0 }
 0x287   :  { %v1582_v44 = vadd.f32 %v1581_v43, %v1508_v41  ;;  %v3756_v45 = vpop.f32.mrb[7].mxu0  ;;  %v3443_v43 = vld [vmem:[%s4930_s5 + $0xa8] sm:$0xff] }
 0x288   :  { %v4062_v45 = vpack.c.bf16 %v3443_v43, %v3442_v42  ;;  %v3325_v43 = vstv %s3490_s23 }
 0x28a   :  { %v1657_v46 = vpop.f32.mrb[8].mxu0 }
 0x28b   :  { %v1661_v47 = vadd.f32 %v1657_v46, %v1582_v44  ;;  %v3763_v48 = vpop.f32.mrb[9].mxu0 }
 0x28c   :  { %v3445_v48 = vld [vmem:[%s4930_s5 + $0xb8] sm:$0xff] }
 0x28e   :  { %v1734_v49 = vpop.f32.mrb[10].mxu0 }
 0x28f   :  { %v1738_v50 = vadd.f32 %v1734_v49, %v1661_v47  ;;  %v3770_v2 = vpop.f32.mrb[11].mxu0  ;;  %v3444_v47 = vld [vmem:[%s4930_s5 + $0xb0] sm:$0xff] }
 0x290   :  { %v4065_v49 = vpack.c.bf16 %v3445_v48, %v3444_v47  ;;  %v3449_v2 = vld [vmem:[%s4931_s6 + $0x18] sm:$0xff] }
 0x292   :  { %v1811_v54 = vpop.f32.mrb[12].mxu0 }
 0x293   :  { %v1815_v55 = vadd.f32 %v1811_v54, %v1738_v50  ;;  %v3777_v56 = vpop.f32.mrb[13].mxu0  ;;  %v3448_v50 = vld [vmem:[%s4931_s6 + $0x10] sm:$0xff]  ;;  %v4205_v54 = vld [vmem:[%s4926_s1] sm:$0xff] }
 0x294   :  { %v4068_v52 = vpack.c.bf16 %v3449_v2, %v3448_v50 }
 0x296   :  { %v1888_v19 = vpop.f32.mrb[14].mxu0 }
 0x297   :  { %v1892_v57 = vadd.f32 %v1888_v19, %v1815_v55  ;;  %v3784_v37 = vpop.f32.mrb[15].mxu0  ;;  %v3466_v19 = vld [vmem:[%s4932_s7 + $0x30] sm:$0xff] }
 0x299   :  { %v3420_v21 = vadd.f32 1.0, %v1892_v57  ;;  %v3467_v57 = vld [vmem:[%s4932_s7 + $0x38] sm:$0xff] }
 0x29a   :  { %v4089_v37 = vpack.c.bf16 %v3467_v57, %v3466_v19 }
 0x29b   :  { %v1894_v58 = vmul.f32 2.5, %v3420_v21  ;;  %v1413_v21 = vstv %s1412_s13 }
 0x29c   :  { %4090 = vmatpush3.bf16.msra.mxu1 %v4089_v37 }
 0x29d   :  { %v1895_v23 = vmul.f32 %v1894_v58, %v1894_v58  ;;  %v1899_v60 = vmul.f32 2.0, %v1894_v58  ;;  %4091 = vmatprep.subr.bf16.mxu1 %v4245_v3  ;;  %v2384_v58 = vstv %s3447_s2 }
 0x29e   :  { %v1407_v59 = vpop.f32.mrb[0].mxu1 }
 0x29f   :  { %v1896_v25 = vsub.f32 0.0, %v1895_v23  ;;  %v1900_v61 = vmul.f32 1.442695, %v1899_v60  ;;  %v4709_v32 = vadd.f32 %v1407_v59, %v1019_v39  ;;  %v3742_v62 = vpop.f32.mrb[1].mxu1  ;;  %v3439_v39 = vld [vmem:[%s4930_s5 + $0x90] sm:$0xff] }
 0x2a0   :  { %v4059_v41 = vpack.c.bf16 %v3440_v40, %v3439_v39  ;;  %v2855_v62 = vld [vmem:[%s4932_s7 + $0x8] sm:$0xff]  ;;  %v3487_v39 = vld [vmem:[%s4932_s7 + $0xb0] sm:$0xff]  ;;  %v3488_v40 = vld [vmem:[%s4932_s7 + $0xb8] sm:$0xff] }
 0x2a1   :  { %v1897_v63 = vmul.f32 1.442695, %v1896_v25  ;;  %4201 = vpow2.f32 %v1900_v61  ;;  %v1414_v60 = vmul.f32 %v4709_v32, %v1413_v21  ;;  %v2854_v61 = vld [vmem:[%s4932_s7] sm:$0xff]  ;;  %v2856_v32 = vld [vmem:[%s4932_s7 + $0x10] sm:$0xff] }
 0x2a2   :  { %v4092_v1 = vpack.c.bf16 %v2855_v62, %v2854_v61 }
 0x2a3   :  { %4203 = vpow2.f32 %v1897_v63 }
 0x2ab   :  { %v4717_v4 = vpop.eup %4201 }
 0x2ac   :  { %v1902_v6 = vmul.f32 0.36787945, %v4717_v4  ;;  %v1904_v26 = vmul.f32 0.049787067, %v4717_v4  ;;  %v1906_v36 = vmul.f32 0.006737947, %v4717_v4 }
 0x2ad   :  { %v4204_v7 = vpop.eup %4203  ;;  %v1908_v44 = vmul.f32 0.000911882, %v4717_v4  ;;  %v1910_v51 = vmul.f32 0.0001234098, %v4717_v4 }
 0x2ae   :  { %v1903_v10 = vmul.f32 %v4204_v7, %v1902_v6 }
 0x2b0   :  { %3794 = vmatmul.mubr.msk.f32.vlgmr.msra.gmra.mrb[16].mxu0 %vm949_vm12, %v1903_v10  ;;  %v1905_v28 = vmul.f32 %v1904_v26, %v1903_v10  ;;  %v3470_v10 = vld [vmem:[%s4932_s7 + $0x40] sm:$0xff] }
 0x2b1   :  { %4039 = vmatpush3.bf16.msra.mxu0 %v4038_v9  ;;  %3804 = vmatprep.mubr.msk.f32.mxu0 %vm4246_vm0, %v4247_v5  ;;  %v4098_v12 = vpack.c.bf16 %v3471_v11, %v3470_v10  ;;  %v3480_v26 = vld [vmem:[%s4932_s7 + $0x80] sm:$0xff] }
 0x2b2   :  { %4040 = vmatprep.subr.bf16.mxu0 %v4245_v3  ;;  %v1907_v8 = vmul.f32 %v1906_v36, %v1905_v28  ;;  %v3486_v36 = vld [vmem:[%s4932_s7 + $0xa8] sm:$0xff] }
 0x2b4   :  { %v1909_v46 = vmul.f32 %v1908_v44, %v1907_v8 }
 0x2b5   :  { %4042 = vmatpush3.bf16.msra.mxu0 %v4041_v13  ;;  %v3472_v13 = vld [vmem:[%s4932_s7 + $0x50] sm:$0xff] }
 0x2b6   :  { %4043 = vmatprep.subr.bf16.mxu0 %v4245_v3  ;;  %v1911_v53 = vmul.f32 %v1910_v51, %v1909_v46  ;;  %v4101_v15 = vpack.c.bf16 %v3473_v14, %v3472_v13 }
 0x2b8   :  { %3805 = vmatmul.mubr.msk.f32.vlgmr.msra.gmra.mrb[16].mxu0 %vm949_vm12, %v4204_v7  ;;  %v2857_v7 = vld [vmem:[%s4932_s7 + $0x18] sm:$0xff] }
 0x2b9   :  { %4045 = vmatpush3.bf16.msra.mxu0 %v4044_v30  ;;  %3815 = vmatprep.mubr.msk.f32.mxu0 %vm4246_vm0, %v4247_v5  ;;  %v4095_v9 = vpack.c.bf16 %v2857_v7, %v2856_v32  ;;  %v3475_v30 = vld [vmem:[%s4932_s7 + $0x60] sm:$0xff] }
 0x2ba   :  { %4046 = vmatprep.subr.bf16.mxu0 %v4245_v3  ;;  %v4104_v18 = vpack.c.bf16 %v3476_v16, %v3475_v30 }
 0x2bd   :  { %4048 = vmatpush3.bf16.msra.mxu0 %v4047_v20  ;;  %v3477_v20 = vld [vmem:[%s4932_s7 + $0x70] sm:$0xff] }
 0x2be   :  { %4049 = vmatprep.subr.bf16.mxu0 %v4245_v3  ;;  %v4107_v24 = vpack.c.bf16 %v3478_v22, %v3477_v20 }
 0x2c0   :  { %3816 = vmatmul.mubr.msk.f32.vlgmr.msra.gmra.mrb[16].mxu0 %vm949_vm12, %v1905_v28 }
 0x2c1   :  { %4051 = vmatpush3.bf16.msra.mxu0 %v4050_v27  ;;  %3826 = vmatprep.mubr.msk.f32.mxu0 %vm4246_vm0, %v4247_v5  ;;  %v3481_v27 = vld [vmem:[%s4932_s7 + $0x88] sm:$0xff] }
 0x2c2   :  { %4052 = vmatprep.subr.bf16.mxu0 %v4245_v3  ;;  %v2845_v55 = vpop.f32.mrb[2].mxu1  ;;  %v4110_v28 = vpack.c.bf16 %v3481_v27, %v3480_v26 }
 0x2c3   :  { %v3892_v56 = vpop.f32.mrb[3].mxu1 }
 0x2c5   :  { %4054 = vmatpush3.bf16.msra.mxu0 %v4053_v33  ;;  %v3483_v33 = vld [vmem:[%s4932_s7 + $0x98] sm:$0xff]  ;;  %s4218_s7 = scalar_lea.vmem %s3337_s25, 128 }
 0x2c6   :  { %4055 = vmatprep.subr.bf16.mxu0 %v4245_v3  ;;  %v4113_v34 = vpack.c.bf16 %v3483_v33, %v3482_v31  ;;  %p4219_p5 = scmp.ne.s32.totalorder %s3337_s25, %s4218_s7  ;;  %p4224_p7 = scmp.lt.s32.totalorder %s4218_s7, %s4218_s7 }
 0x2c8   :  { %3827 = vmatmul.mubr.msk.f32.vlgmr.msra.gmra.mrb[16].mxu0 %vm949_vm12, %v1907_v8  ;;  %p4225_p8 = por %p4224_p7, %p4223_p6 }
 0x2c9   :  { %4057 = vmatpush3.bf16.msra.mxu0 %v4056_v38  ;;  %3837 = vmatprep.mubr.msk.f32.mxu0 %vm4246_vm0, %v4247_v5  ;;  %v4116_v38 = vpack.c.bf16 %v3486_v36, %v3485_v35 }
 0x2ca   :  { %4058 = vmatprep.subr.bf16.mxu0 %v4245_v3  ;;  %p4226_p9 = pnand %p4225_p8, %p4219_p5 }
 0x2cd   :  { %4060 = vmatpush3.bf16.msra.mxu0 %v4059_v41  ;;  %v4119_v41 = vpack.c.bf16 %v3488_v40, %v3487_v39 }
 0x2ce   :  { %4061 = vmatprep.subr.bf16.mxu0 %v4245_v3 }
 0x2d0   :  { %3838 = vmatmul.mubr.msk.f32.vlgmr.msra.gmra.mrb[16].mxu0 %vm949_vm12, %v1909_v46 }
 0x2d1   :  { %4063 = vmatpush3.bf16.msra.mxu0 %v4062_v45  ;;  %3848 = vmatprep.mubr.msk.f32.mxu0 %vm4246_vm0, %v4247_v5 }
 0x2d2   :  { %4064 = vmatprep.subr.bf16.mxu0 %v4245_v3 }
 0x2d5   :  { %4066 = vmatpush3.bf16.msra.mxu0 %v4065_v49 }
 0x2d6   :  { %4067 = vmatprep.subr.bf16.mxu0 %v4245_v3 }
 0x2d8   :  { %3849 = vmatmul.mubr.msk.f32.vlgmr.msra.gmra.mrb[16].mxu0 %vm949_vm12, %v1911_v53 }
 0x2d9   :  { %4069 = vmatpush3.bf16.msra.mxu0 %v4068_v52  ;;  %3855 = vmatprep.mubr.msk.f32.mxu0 %vm4246_vm0, %v4247_v5 }
 0x2dc   :  { %3856 = vmatmul.mubr.msk.f32.vlgmr.msra.gmra.mrb[18].mxu0 %vm267_vm1, %v4205_v54  ;;  %vm3328_vm1 = vcmask 64512  }
 0x3ab   :  { %v2378_v23 = vpop.f32.mrb[16].mxu0 }
 0x3ac   :  { %v2385_v59 = vmul.f32 %v2384_v58, %v2378_v23  ;;  %v3850_v25 = vpop.f32.mrb[17].mxu0 }
 0x3ae   :  { %v4830_v63 = vadd.f32 %v2385_v59, %v1414_v60 }
 0x3af   :  { %v2465_v0 = vpop.f32.mrb[18].mxu0 }
 0x3b0   :  { %v4122_v4 = vadd.f32 %v2845_v55, %v2465_v0  ;;  %v3857_v6 = vpop.f32.mrb[19].mxu0 }
 0x3b2   :  { %3902 = vmatmul.mubr.msk.f32.vlgmr.msra.gmra.mrb[4].mxu1 %vm949_vm12, %v4122_v4 }
 0x3b3   :  { %4093 = vmatpush3.bf16.msra.mxu1 %v4092_v1  ;;  %3912 = vmatprep.mubr.msk.f32.mxu1 %vm4246_vm0, %v4247_v5 }
 0x3b4   :  { %4094 = vmatprep.subr.bf16.mxu1 %v4245_v3 }
 0x3b7   :  { %4096 = vmatpush3.bf16.msra.mxu1 %v4095_v9 }
 0x3b8   :  { %4097 = vmatprep.subr.bf16.mxu1 %v4245_v3 }
 0x3ba   :  { %3913 = vmatmul.mubr.msk.f32.vlgmr.msra.gmra.mrb[4].mxu1 %vm949_vm12, %v4254_v17  ;;  %v2850_v17 = vmul.f32 %v4122_v4, %v4122_v4 }
 0x3bb   :  { %4099 = vmatpush3.bf16.msra.mxu1 %v4098_v12  ;;  %3923 = vmatprep.mubr.msk.f32.mxu1 %vm4246_vm0, %v4247_v5 }
 0x3bc   :  { %4100 = vmatprep.subr.bf16.mxu1 %v4245_v3  ;;  %v2851_v29 = vmul.f32 %v4122_v4, %v2850_v17 }
 0x3be   :  { %v2852_v8 = vmul.f32 %v4122_v4, %v2851_v29 }
 0x3bf   :  { %4102 = vmatpush3.bf16.msra.mxu1 %v4101_v15 }
 0x3c0   :  { %4103 = vmatprep.subr.bf16.mxu1 %v4245_v3  ;;  %v2853_v42 = vmul.f32 %v4122_v4, %v2852_v8 }
 0x3c2   :  { %3924 = vmatmul.mubr.msk.f32.vlgmr.msra.gmra.mrb[4].mxu1 %vm949_vm12, %v2850_v17 }
 0x3c3   :  { %4105 = vmatpush3.bf16.msra.mxu1 %v4104_v18  ;;  %3934 = vmatprep.mubr.msk.f32.mxu1 %vm4246_vm0, %v4247_v5 }
 0x3c4   :  { %4106 = vmatprep.subr.bf16.mxu1 %v4245_v3 }
 0x3c7   :  { %4108 = vmatpush3.bf16.msra.mxu1 %v4107_v24 }
 0x3c8   :  { %4109 = vmatprep.subr.bf16.mxu1 %v4245_v3 }
 0x3ca   :  { %3935 = vmatmul.mubr.msk.f32.vlgmr.msra.gmra.mrb[4].mxu1 %vm949_vm12, %v2851_v29 }
 0x3cb   :  { %4111 = vmatpush3.bf16.msra.mxu1 %v4110_v28  ;;  %3945 = vmatprep.mubr.msk.f32.mxu1 %vm4246_vm0, %v4247_v5 }
 0x3cc   :  { %4112 = vmatprep.subr.bf16.mxu1 %v4245_v3 }
 0x3cf   :  { %4114 = vmatpush3.bf16.msra.mxu1 %v4113_v34 }
 0x3d0   :  { %4115 = vmatprep.subr.bf16.mxu1 %v4245_v3 }
 0x3d2   :  { %3946 = vmatmul.mubr.msk.f32.vlgmr.msra.gmra.mrb[4].mxu1 %vm949_vm12, %v2852_v8 }
 0x3d3   :  { %4117 = vmatpush3.bf16.msra.mxu1 %v4116_v38  ;;  %3956 = vmatprep.mubr.msk.f32.mxu1 %vm4246_vm0, %v4247_v5 }
 0x3d4   :  { %4118 = vmatprep.subr.bf16.mxu1 %v4245_v3 }
 0x3d7   :  { %4120 = vmatpush3.bf16.msra.mxu1 %v4119_v41 }
 0x3da   :  { %3957 = vmatmul.mubr.msk.f32.vlgmr.msra.gmra.mrb[4].mxu1 %vm949_vm12, %v2853_v42 }
 0x4ad   :  { %v3319_v44 = vpop.f32.mrb[4].mxu1 }
 0x4ae   :  { %v3326_v45 = vmul.f32 %v3325_v43, %v3319_v44  ;;  %v3958_v46 = vpop.f32.mrb[5].mxu1 }
 0x4b0   :  { %v3327_v47 = vadd.f32 %v3326_v45, %v4830_v63 }
 0x4b2   :  { %3329 = vst.msk [vmem:[#allocation5] sm:$0xff] %vm3328_vm1, %v3327_v47 }
 0x4b3   :  { %4229 = shalt.err (!%p4226_p9)
}
 0x4b4   :  { %s4230_s27 = scalar_lea.hbm %s4933_s8, 128 }
 0x4b5   :  { %p4231_p10 = scmp.ne.s32.totalorder %s4933_s8, %s4230_s27  ;;  %p4234_p11 = scmp.lt.u32.totalorder %s4230_s27, %s4933_s8 }
 0x4b7   :  { %p4236_p12 = pnand %p4234_p11, %p4231_p10 }
 0x4b9   :  { %4239 = shalt.err (!%p4236_p12)
}
 0x4ba   :  { %3339 = dma.vmem_to_hbm [thread:$0]  %s3337_s25, 128, %s4933_s8, [#allocation3]  }
 0x4bb   :  { %4242 = dma.done.wait [#allocation3], 128  }
 0x4bc   :  { %4243 = vsyncadd [#allocation3], 4294967168 }
 0x4bd   :  { %3343 = vsyncpa [#allocation3], 1 }
 0x4be   :  { %3344 = vsyncpa [#allocation4], 1 }

</bundles_post_ra>
